<compile_context>
chip_gen: v7x
topology: tpu7x:2x2x1
jax: 0.10.0
libtpu: 0.0.40
codegen_flags: <defaults>
</compile_context>

<pallas_src>
import math

import jax
import jax.numpy as jnp
from jax.experimental import pallas as pl
from jax.experimental.pallas import tpu as pltpu

_GELU_C = math.sqrt(2.0 / math.pi)


def _mlp_kernel(x_ref, w_fc_ref, b_fc_ref, w_proj_ref, b_proj_ref, o_ref, acc_ref):
    # x_ref:      (tm, C)   native dtype (f32 or bf16)
    # w_fc_ref:   (C, th)   b_fc_ref:   (1, th)
    # w_proj_ref: (th, C)   b_proj_ref: (1, C)
    # o_ref:      (tm, C)   acc_ref:    (tm, C) f32 VMEM scratch
    h_idx = pl.program_id(1)

    @pl.when(h_idx == 0)
    def _():
        acc_ref[...] = jnp.zeros_like(acc_ref)

    # c_fc slice: native-dtype operands on the MXU, f32 accumulation.
    h = jnp.dot(x_ref[...], w_fc_ref[...], preferred_element_type=jnp.float32)
    h = h + b_fc_ref[...].astype(jnp.float32)

    # GELU (tanh approximation), matches torch.nn.GELU(approximate='tanh').
    # Factored as h*(1 + 0.044715*h*h) to save one vmul; tanh runs on the EUP slot.
    g = 0.5 * h * (1.0 + jnp.tanh(_GELU_C * h * (1.0 + 0.044715 * h * h)))

    # c_proj slice: cast activation back to the weight dtype for the MXU and
    # accumulate the partial product in the f32 scratch.
    acc_ref[...] += jnp.dot(g.astype(w_proj_ref.dtype), w_proj_ref[...],
                            preferred_element_type=jnp.float32)

    @pl.when(h_idx == pl.num_programs(1) - 1)
    def _():
        out = acc_ref[...] + b_proj_ref[...].astype(jnp.float32)
        o_ref[...] = out.astype(o_ref.dtype)


def _pick_tile(n, candidates):
    for c in candidates:
        if n % c == 0:
            return c
    return n


def mlp_pallas(x, w_fc_t, b_fc, w_proj_t, b_proj, *, tm=None, th=None):
    """x: (B, T, C). w_fc_t: (C, H). b_fc: (H,). w_proj_t: (H, C). b_proj: (C,)."""
    B, T, C = x.shape
    H = w_fc_t.shape[1]
    M = B * T
    x2d = x.reshape(M, C)

    # Row tile: up to 256 (fills the 256-wide MXU on v6e/v7x, fine on v5e too).
    if tm is None:
        tm = _pick_tile(M, (256, 128, 64, 32, 16, 8))
    # Hidden tile: bounds weight-block + (tm, th) intermediate VMEM footprint.
    if th is None:
        th = _pick_tile(H, (2048, 1024, 512, 256, 128))
    assert M % tm == 0, "M must be divisible by the row tile"
    assert H % th == 0, "H must be divisible by the hidden tile"

    b_fc_2d = b_fc.reshape(1, H)
    b_proj_2d = b_proj.reshape(1, C)

    in_isz = jnp.dtype(x.dtype).itemsize
    out_isz = in_isz
    # Double-buffered tiles + f32 accumulator scratch (+50% headroom, 16 MiB floor,
    # 64 MiB cap so the budget is valid per-TC even on v7x).
    vmem_bytes = (
        2 * tm * C * in_isz        # x tile
        + 2 * C * th * in_isz      # W_fc tile
        + 2 * th * in_isz          # b_fc tile
        + 2 * th * C * in_isz      # W_proj tile
        + 2 * C * out_isz          # b_proj
        + 2 * tm * C * out_isz     # output tile
        + tm * C * 4               # f32 accumulator scratch
    )
    vmem_limit = min(max(int(vmem_bytes * 1.5), 16 * 1024 * 1024), 64 * 1024 * 1024)

    cost = pl.CostEstimate(
        flops=4 * M * C * H,            # two matmuls, 2*M*C*H flops each
        transcendentals=M * H,          # one tanh per hidden activation
        bytes_accessed=(x2d.size + w_fc_t.size + b_fc.size
                        + w_proj_t.size + b_proj.size) * in_isz
                       + M * C * out_isz,
    )

    # NOTE(perf feedback): after tiling H, the weight/bias blocks are no longer
    # grid-invariant (they vary with h) and need default double-buffering for the
    # pipeline; the only invariant operand left is b_proj (a few KiB), so
    # single-buffering it via pipeline_mode=pl.Buffered(1) would be negligible
    # and is omitted for robustness.
    out2d = pl.pallas_call(
        _mlp_kernel,
        out_shape=jax.ShapeDtypeStruct((M, C), x.dtype),
        grid_spec=pltpu.PrefetchScalarGridSpec(
            num_scalar_prefetch=0,
            grid=(M // tm, H // th),                         # reduction axis (H) last
            in_specs=[
                pl.BlockSpec((tm, C), lambda i, h: (i, 0)),  # x rows
                pl.BlockSpec((C, th), lambda i, h: (0, h)),  # W_fc^T hidden slice
                pl.BlockSpec((1, th), lambda i, h: (0, h)),  # b_fc hidden slice
                pl.BlockSpec((th, C), lambda i, h: (h, 0)),  # W_proj^T hidden slice
                pl.BlockSpec((1, C), lambda i, h: (0, 0)),   # b_proj
            ],
            out_specs=pl.BlockSpec((tm, C), lambda i, h: (i, 0)),
            scratch_shapes=[pltpu.VMEM((tm, C), jnp.float32)],
        ),
        compiler_params=pltpu.CompilerParams(
            dimension_semantics=("parallel", "arbitrary"),
            vmem_limit_bytes=vmem_limit,
        ),
        cost_estimate=cost,
    )(x2d, w_fc_t, b_fc_2d, w_proj_t, b_proj_2d)

    return out2d.reshape(B, T, C)


def _reference_mlp(x, w_fc_t, b_fc, w_proj_t, b_proj):
    h = x @ w_fc_t + b_fc
    g = 0.5 * h * (1.0 + jnp.tanh(_GELU_C * (h + 0.044715 * h ** 3)))
    return g @ w_proj_t + b_proj


if __name__ == "__main__":
    # Small shapes consistent with the module: (batch, seq, n_embd=384), hidden=4*n_embd.
    B, T, C = 2, 8, 384
    H = 4 * C

    key = jax.random.PRNGKey(0)
    k_x, k_wf, k_bf, k_wp, k_bp = jax.random.split(key, 5)

    x = jax.random.normal(k_x, (B, T, C), dtype=jnp.float32)

    # Deterministic nn.Linear-style init; weights stored pre-transposed (in, out).
    w_fc_t = jax.random.normal(k_wf, (C, H), dtype=jnp.float32) * (1.0 / math.sqrt(C))
    b_fc = jax.random.normal(k_bf, (H,), dtype=jnp.float32) * 0.02
    w_proj_t = jax.random.normal(k_wp, (H, C), dtype=jnp.float32) * (1.0 / math.sqrt(H))
    b_proj = jax.random.normal(k_bp, (C,), dtype=jnp.float32) * 0.02

    y = mlp_pallas(x, w_fc_t, b_fc, w_proj_t, b_proj)
    y = jax.block_until_ready(y)

    y_ref = _reference_mlp(x, w_fc_t, b_fc, w_proj_t, b_proj)
    assert y.shape == (B, T, C)
    assert jnp.allclose(y, y_ref, atol=1e-3, rtol=1e-3), "mismatch vs reference"

    print("KERNEL_OK")
</pallas_src>

<mosaic_0001>
module attributes {stable_mosaic.version = 11 : i64} {
  func.func @_mlp_kernel(%arg0: i32, %arg1: i32, %arg2: memref<16x384xf32, #tpu.memory_space<vmem>>, %arg3: memref<384x512xf32, #tpu.memory_space<vmem>>, %arg4: memref<1x512xf32, #tpu.memory_space<vmem>>, %arg5: memref<512x384xf32, #tpu.memory_space<vmem>>, %arg6: memref<1x384xf32, #tpu.memory_space<vmem>>, %arg7: memref<16x384xf32, #tpu.memory_space<vmem>>, %arg8: memref<16x384xf32, #tpu.memory_space<vmem>>) attributes {dimension_semantics = [#tpu.dimension_semantics<parallel>, #tpu.dimension_semantics<arbitrary>], iteration_bounds = array<i64: 1, 3>, scalar_prefetch = 0 : i64, scratch_operands = 1 : i64, tpu.core_type = #tpu.core_type<tc>, window_params = [{transform_indices = @transform_0, window_bounds = array<i64: 16, 384>}, {transform_indices = @transform_1, window_bounds = array<i64: 384, 512>}, {transform_indices = @transform_2, window_bounds = array<i64: 1, 512>}, {transform_indices = @transform_3, window_bounds = array<i64: 512, 384>}, {pipeline_mode = #tpu.pipeline_mode<synchronous>, transform_indices = @transform_4, window_bounds = array<i64: 1, 384>}, {transform_indices = @transform_5, window_bounds = array<i64: 16, 384>}]} {
    %c0_i32 = arith.constant 0 : i32
    %0 = arith.cmpi eq, %arg1, %c0_i32 : i32
    %1 = arith.extui %0 : i1 to i32
    %c0_i32_0 = arith.constant 0 : i32
    %2 = arith.cmpi ne, %1, %c0_i32_0 : i32
    scf.if %2 {
      %cst_19 = arith.constant 0.000000e+00 : f32
      %31 = vector.broadcast %cst_19 : f32 to vector<16x384xf32>
      %c0_20 = arith.constant 0 : index
      %c0_21 = arith.constant 0 : index
      %32 = vector.load %arg8[%c0_20, %c0_21] : memref<16x384xf32, #tpu.memory_space<vmem>>, vector<16x384xf32>
      tpu.vector_store %arg8[%c0_20, %c0_21], %31 {strides = array<i32>} : memref<16x384xf32, #tpu.memory_space<vmem>>, vector<16x384xf32>,
    } else {
    }
    %c0 = arith.constant 0 : index
    %c0_1 = arith.constant 0 : index
    %3 = vector.load %arg2[%c0, %c0_1] : memref<16x384xf32, #tpu.memory_space<vmem>>, vector<16x384xf32>
    %c0_2 = arith.constant 0 : index
    %c0_3 = arith.constant 0 : index
    %4 = vector.load %arg3[%c0_2, %c0_3] : memref<384x512xf32, #tpu.memory_space<vmem>>, vector<384x512xf32>
    %cst = arith.constant dense<0.000000e+00> : vector<16x512xf32>
    %5 = tpu.matmul %3, %4, %cst {dimension_numbers = #tpu.dot_dimension_numbers<[1], [0], [0], [1], [0, 0, 1, 1], [], []>} : vector<16x384xf32>, vector<384x512xf32>, vector<16x512xf32> -> vector<16x512xf32>
    %c0_4 = arith.constant 0 : index
    %c0_5 = arith.constant 0 : index
    %6 = vector.load %arg4[%c0_4, %c0_5] : memref<1x512xf32, #tpu.memory_space<vmem>>, vector<1x512xf32>
    %7 = vector.broadcast %6 : vector<1x512xf32> to vector<16x512xf32>
    %8 = arith.addf %5, %7 : vector<16x512xf32>
    %cst_6 = arith.constant 5.000000e-01 : f32
    %9 = vector.broadcast %cst_6 : f32 to vector<16x512xf32>
    %10 = arith.mulf %9, %8 : vector<16x512xf32>
    %cst_7 = arith.constant 0.797884583 : f32
    %11 = vector.broadcast %cst_7 : f32 to vector<16x512xf32>
    %12 = arith.mulf %11, %8 : vector<16x512xf32>
    %cst_8 = arith.constant 4.471500e-02 : f32
    %13 = vector.broadcast %cst_8 : f32 to vector<16x512xf32>
    %14 = arith.mulf %13, %8 : vector<16x512xf32>
    %15 = arith.mulf %14, %8 : vector<16x512xf32>
    %cst_9 = arith.constant 1.000000e+00 : f32
    %16 = vector.broadcast %cst_9 : f32 to vector<16x512xf32>
    %17 = arith.addf %16, %15 : vector<16x512xf32>
    %18 = arith.mulf %12, %17 : vector<16x512xf32>
    %19 = math.tanh %18 : vector<16x512xf32>
    %cst_10 = arith.constant 1.000000e+00 : f32
    %20 = vector.broadcast %cst_10 : f32 to vector<16x512xf32>
    %21 = arith.addf %20, %19 : vector<16x512xf32>
    %22 = arith.mulf %10, %21 : vector<16x512xf32>
    %c0_11 = arith.constant 0 : index
    %c0_12 = arith.constant 0 : index
    %23 = vector.load %arg8[%c0_11, %c0_12] : memref<16x384xf32, #tpu.memory_space<vmem>>, vector<16x384xf32>
    %c0_13 = arith.constant 0 : index
    %c0_14 = arith.constant 0 : index
    %24 = vector.load %arg5[%c0_13, %c0_14] : memref<512x384xf32, #tpu.memory_space<vmem>>, vector<512x384xf32>
    %cst_15 = arith.constant dense<0.000000e+00> : vector<16x384xf32>
    %25 = tpu.matmul %22, %24, %cst_15 {dimension_numbers = #tpu.dot_dimension_numbers<[1], [0], [0], [1], [0, 0, 1, 1], [], []>} : vector<16x512xf32>, vector<512x384xf32>, vector<16x384xf32> -> vector<16x384xf32>
    %26 = arith.addf %23, %25 : vector<16x384xf32>
    %c0_16 = arith.constant 0 : index
    %c0_17 = arith.constant 0 : index
    %27 = vector.load %arg8[%c0_16, %c0_17] : memref<16x384xf32, #tpu.memory_space<vmem>>, vector<16x384xf32>
    tpu.vector_store %arg8[%c0_16, %c0_17], %26 {strides = array<i32>} : memref<16x384xf32, #tpu.memory_space<vmem>>, vector<16x384xf32>,
    %c2_i32 = arith.constant 2 : i32
    %28 = arith.cmpi eq, %arg1, %c2_i32 : i32
    %29 = arith.extui %28 : i1 to i32
    %c0_i32_18 = arith.constant 0 : i32
    %30 = arith.cmpi ne, %29, %c0_i32_18 : i32
    scf.if %30 {
      %c0_19 = arith.constant 0 : index
      %c0_20 = arith.constant 0 : index
      %31 = vector.load %arg8[%c0_19, %c0_20] : memref<16x384xf32, #tpu.memory_space<vmem>>, vector<16x384xf32>
      %c0_21 = arith.constant 0 : index
      %c0_22 = arith.constant 0 : index
      %32 = vector.load %arg6[%c0_21, %c0_22] : memref<1x384xf32, #tpu.memory_space<vmem>>, vector<1x384xf32>
      %33 = vector.broadcast %32 : vector<1x384xf32> to vector<16x384xf32>
      %34 = arith.addf %31, %33 : vector<16x384xf32>
      %c0_23 = arith.constant 0 : index
      %c0_24 = arith.constant 0 : index
      %35 = vector.load %arg7[%c0_23, %c0_24] : memref<16x384xf32, #tpu.memory_space<vmem>>, vector<16x384xf32>
      tpu.vector_store %arg7[%c0_23, %c0_24], %34 {strides = array<i32>} : memref<16x384xf32, #tpu.memory_space<vmem>>, vector<16x384xf32>,
    } else {
    }
    return
  }
  func.func @transform_0(%arg0: i32, %arg1: i32) -> (i32, i32) {
    %c0_i32 = arith.constant 0 : i32
    %c0_i32_0 = arith.constant 0 : i32
    return %arg0, %c0_i32 : i32, i32
  }
  func.func @transform_1(%arg0: i32, %arg1: i32) -> (i32, i32) {
    %c0_i32 = arith.constant 0 : i32
    %c0_i32_0 = arith.constant 0 : i32
    return %c0_i32, %arg1 : i32, i32
  }
  func.func @transform_2(%arg0: i32, %arg1: i32) -> (i32, i32) {
    %c0_i32 = arith.constant 0 : i32
    %c0_i32_0 = arith.constant 0 : i32
    return %c0_i32, %arg1 : i32, i32
  }
  func.func @transform_3(%arg0: i32, %arg1: i32) -> (i32, i32) {
    %c0_i32 = arith.constant 0 : i32
    %c0_i32_0 = arith.constant 0 : i32
    return %arg1, %c0_i32 : i32, i32
  }
  func.func @transform_4(%arg0: i32, %arg1: i32) -> (i32, i32) {
    %c0_i32 = arith.constant 0 : i32
    %c0_i32_0 = arith.constant 0 : i32
    %c0_i32_1 = arith.constant 0 : i32
    return %c0_i32, %c0_i32_0 : i32, i32
  }
  func.func @transform_5(%arg0: i32, %arg1: i32) -> (i32, i32) {
    %c0_i32 = arith.constant 0 : i32
    %c0_i32_0 = arith.constant 0 : i32
    return %arg0, %c0_i32 : i32, i32
  }
}

</mosaic_0001>

<bundles_post_ra>
// kernel: tpu_custom_call.1
= control target key start
LH: loop header
LB: loop body
LE: loop exit
PB: predicated region body
PF: predicated region fallthrough
CT: control target
= control target key end

     0   :  { %s3336_s0 = inlined_call_operand.hbm [shape: f32[16,384], index: 0, kind: input, shape index: {}]   ;;  %s3337_s1 = inlined_call_operand.hbm [shape: f32[384,1536], index: 1, kind: input, shape index: {}]   ;;  %s3338_s2 = inlined_call_operand.hbm [shape: f32[1,1536], index: 2, kind: input, shape index: {}]   ;;  %s3339_s3 = inlined_call_operand.hbm [shape: f32[1536,384], index: 3, kind: input, shape index: {}]   ;;  %s3340_s4 = inlined_call_operand.hbm [shape: f32[1,384], index: 4, kind: input, shape index: {}]   ;;  %s3341_s5 = inlined_call_operand.hbm [shape: f32[16,384], index: 5, kind: output, shape index: {}]  }
   0x1   :  { %3356 = sst [smem:[#allocation21_spill]] %s3337_s1 }
   0x2   :  { %3357 = sst [smem:[#allocation22_spill]] %s3340_s4 }
   0x3   :  { %3358 = sst [smem:[#allocation23_spill]] %s3341_s5 }
   0x4   :  { %10 = vsyncpa [#allocation4], 0 }
   0x5   :  { %11 = vsyncpa [#allocation7], 0 }
   0x6   :  { %13 = vsyncpa [#allocation7 + $0x1], 0 }
   0x7   :  { %14 = vsyncpa [#allocation10], 0 }
   0x8   :  { %16 = vsyncpa [#allocation10 + $0x1], 0 }
   0x9   :  { %17 = vsyncpa [#allocation5], 0  ;;  %s2580_s18 = smov 0   ;;  %s2582_s19 = smov 0  }
   0xa   :  { %s2584_s20 = smov 0   ;;  %s2586_s21 = smov 0  }
   0xb   :  { %s2588_s22 = smov 0   ;;  %s2590_s23 = smov 0  }
   0xc LB: > { %3359 = sst [smem:[#allocation18_spill]] %s2525_s21  ;;  %s2609_s24 = sadd.s32 4294967295, %s2533_s23   ;;  %s2533_s23 = sphi %s2590_s23, %s23_s23   ;;  %s2529_s22 = sphi %s2588_s22, %s3392_s22   ;;  %s2525_s21 = sphi %s2586_s21, %s3391_s21   ;;  %s2521_s20 = sphi %s2584_s20, %s3390_s20   ;;  %s2517_s19 = sphi %s2582_s19, %s3389_s19   ;;  %s2513_s18 = sphi %s2580_s18, %s3388_s18  }
   0xd   : > { %s68_s25 = sadd.s32 1, %s2521_s20  ;;  %p75_p0 = scmp.ne.s32.totalorder %s2521_s20, %s2517_s19 }
   0xe   : > { %p76_p1 = scmp.eq.s32.totalorder %s2533_s23, 0  ;;  %p81_p2 = scmp.ne.s32.totalorder %s2517_s19, %s2513_s18 }
   0xf   : > { %p3342_p3 = scmp.eq.s32.totalorder %s2609_s24, 0  ;;  %p1669_p5 = scmp.ge.s32.totalorder %s2533_s23, 1 }
  0x10   : > { %p77_p4 = por %p76_p1, %p75_p0  ;;  %p191_p7 = scmp.lt.s32.totalorder %s2533_s23, 4 }
  0x11   : > { %p2620_p6 = por %p3342_p3, %p81_p2  ;;  %s2535_s28 = smov [#allocation11]  }
  0x12   : > { %p2625_p8 = pnand %p1669_p5, %p191_p7  ;;  %s221_s29 = sshll.u32 %s2535_s28, 4  ;;  %s222_s29 = int_to_ptr.vmem [resolvable:$true] %s221_s29 }
  0x13   : > { %s3360_s26 = scalar_select %p2620_p6, 1, 0 }
  0x14   : > { %s3361_s27 = scalar_select %p2625_p8, 1, 0 }
  0x15   : > { %p2195_p9 = pneg %p2625_p8  ;;  %p2214_p10 = scmp.lt.s32.totalorder %s2533_s23, 3 }
  0x16   : > { %s3346_s30 = sand.u32 1, %s2533_s23   ;;  %s3364_s4 = sld [smem:[#allocation22_spill]] }
  0x17   : > { %p2635_p11 = pnand %p2195_p9, %p3342_p3  ;;  %p2639_p12 = pnand %p2214_p10, %p77_p4 }
  0x19   : > { %s3362_s6 = scalar_select %p2635_p11, 1, 0 }
  0x1a   : > { %s3363_s7 = scalar_select %p2639_p12, 1, 0 }
  0x1b   : > { %p3347_p0 = pneg %p2635_p11 }
  0x1c   : > { %s2295_s10 = scalar_lea.hbm %s3364_s4, 48 }
  0x1d   : > { %p2296_p13 = scmp.ne.s32.totalorder %s3364_s4, %s2295_s10  ;;  %p2302_p4 = scmp.lt.u32.totalorder %s2295_s10, %s3364_s4 }
  0x1f   : > { %p2298_p1 = pnand %p3347_p0, %p2296_p13 }
  0x21   : > { %p2299_p2 = pneg %p2298_p1 }
  0x23   : > { %p2304_p5 = pnand %p2302_p4, %p2299_p2 }
  0x25   : > { %2307 = shalt.err (!%p2304_p5)
}
  0x26   : > { %s2308_s15 = scalar_lea.vmem %s222_s29, 48  ;;  %s2315_s16 = scalar_lea.vmem %s222_s29, 64 }
  0x27   : > { %p2309_p7 = scmp.ne.s32.totalorder %s222_s29, %s2308_s15  ;;  %p2316_p3 = scmp.lt.s32.totalorder %s222_s29, %s222_s29 }
  0x28   : > { %p2317_p6 = scmp.lt.s32.totalorder %s2315_s16, %s2308_s15 }
  0x29   : > { %p2311_p9 = pnand %p2309_p7, %p3347_p0 }
  0x2a   : > { %p2318_p8 = por %p2317_p6, %p2316_p3 }
  0x2b   : > { %p2312_p10 = pneg %p2311_p9 }
  0x2d   : > { %p2319_p12 = pnand %p2318_p8, %p2312_p10 }
  0x2f   : > { %2322 = shalt.err (!%p2319_p12)
}
  0x30   : > { %2201 = dma.hbm_to_vmem [thread:$0]  (!%p2635_p11), %s3364_s4, 48, %s222_s29, [#allocation10]  }
  0x31   : > { %s32_s28 = sadd.s32 1, %s2529_s22  ;;  %s3350_s8 = sand.u32 1, %s2521_s20  }
  0x32   : > { %p33_p3 = scmp.ge.s32.totalorder %s32_s28, 3  ;;  %s2669_s9 = smul.u32 1536, %s3350_s8 }
  0x33   : > { %s1691_s10 = sshll.u32 %s2529_s22, 9  ;;  %s3366_s1 = sld [smem:[#allocation21_spill]] }
  0x34   : > { %s3394_s28 = smov (%p33_p3, %s32_s28), 0  ;;  %s236_s14 = scalar_lea.vmem [#allocation6], %s2669_s9 }
  0x35   : > { %3365 = sst [smem:[#allocation19_spill]] %s3394_s28  ;;  %s65_s29 = ssub.s32 %s2529_s22, %s3394_s28 }
  0x36   : > { %s243_s15 = sshll.u32 %s236_s14, 4  ;;  %p66_p6 = scmp.eq.s32.totalorder %s65_s29, 0  ;;  %s2682_s15 = int_to_ptr.vmem [resolvable:$true] %s243_s15 }
  0x37   : > { %s2691_s17 = scalar_lea.sflag [#allocation7], %s3346_s30  ;;  %p3368_p12 = scmp.ne.s32.totalorder %s3363_s7, 0 }
  0x38   : > { %s2687_s16 = scalar_select %p66_p6, %s2521_s20, %s68_s25  }
  0x39   : > { %s2677_s13 = scalar_lea.hbm %s3366_s1, %s1691_s10  ;;  %p2697_p13 = pneg %p3368_p12 }
  0x3a   : > { %3367 = sst [smem:[#allocation20_spill]] %s2687_s16  ;;  %s2323_s18 = scalar_lea.hbm %s2677_s13, 24576 }
  0x3b   : > { %p2324_p8 = scmp.ne.s32.totalorder %s2677_s13, %s2323_s18  ;;  %s2328_s29 = scalar_lea.hbm %s3366_s1, 73728 }
  0x3c   : > { %s3369_s10 = scalar_select %p2697_p13, 1, 0 }
  0x3d   : > { %p2326_p1 = pnand %p2697_p13, %p2324_p8  ;;  %p2329_p4 = scmp.lt.u32.totalorder %s2677_s13, %s3366_s1 }
  0x3e   : > { %p2330_p5 = scmp.lt.u32.totalorder %s2328_s29, %s2323_s18  ;;  %p2332_p9 = scmp.lt.u32.totalorder %s2323_s18, %s2677_s13 }
  0x3f   : > { %p2327_p2 = pneg %p2326_p1 }
  0x40   : > { %p2331_p7 = por %p2330_p5, %p2329_p4 }
  0x42   : > { %p2333_p10 = por %p2332_p9, %p2331_p7 }
  0x44   : > { %p2334_p3 = pnand %p2333_p10, %p2327_p2 }
  0x46   : > { %2337 = shalt.err (!%p2334_p3)
}
  0x47   : > { %s2338_s30 = scalar_lea.vmem %s2682_s15, 24576  ;;  %s2536_s11 = smov [#allocation6]  }
  0x48   : > { %p2339_p6 = scmp.ne.s32.totalorder %s2682_s15, %s2338_s30  ;;  %s2343_s12 = sshll.u32 %s2536_s11, 4  ;;  %s2344_s12 = int_to_ptr.vmem [resolvable:$false] %s2343_s12 }
  0x49   : > { %s2345_s25 = scalar_lea.vmem %s2344_s12, 49152  ;;  %p2346_p0 = scmp.lt.s32.totalorder %s2682_s15, %s2344_s12 }
  0x4a   : > { %p2341_p8 = pnand %p2339_p6, %p2697_p13  ;;  %p2347_p11 = scmp.lt.s32.totalorder %s2345_s25, %s2338_s30 }
  0x4c   : > { %p2342_p1 = pneg %p2341_p8  ;;  %p2348_p4 = por %p2347_p11, %p2346_p0 }
  0x4e   : > { %p2349_p5 = pnand %p2348_p4, %p2342_p1 }
  0x50   : > { %2352 = shalt.err (!%p2349_p5)
}
  0x51   : > { %s2537_s18 = smov 1536   ;;  %s2538_s29 = smov 512  }
  0x52   : > { %s2539_s14 = smov 32   ;;  %s2540_s8 = smov [#allocation3]  }
  0x53   : > { %2205 = dma.hbm_to_vmem [thread:$0]  (!%p3368_p12), %s2677_s13, 24576, %s2682_s15, %s2691_s17, %s2537_s18, %s2538_s29, %s2539_s14  }
  0x54   : > { %s207_s11 = sshll.u32 %s2540_s8, 4  ;;  %s3370_s1 = sand.u32 1, %s2521_s20   ;;  %s208_s11 = int_to_ptr.vmem [resolvable:$true] %s207_s11 }
  0x55   : > { %s1675_s12 = sshll.u32 %s3370_s1, 2  ;;  %s2353_s4 = scalar_lea.hbm %s3336_s0, 768 }
  0x56   : > { %p2354_p11 = scmp.ne.s32.totalorder %s3336_s0, %s2353_s4  ;;  %p3371_p0 = scmp.ne.s32.totalorder %s3362_s6, 0 }
  0x57   : > { %p2360_p10 = scmp.lt.u32.totalorder %s2353_s4, %s3336_s0 }
  0x58   : > { %p3372_p2 = pneg %p3371_p0 }
  0x5a   : > { %p2356_p7 = pnand %p2354_p11, %p3372_p2 }
  0x5c   : > { %p2357_p9 = pneg %p2356_p7 }
  0x5e   : > { %p2362_p3 = pnand %p2360_p10, %p2357_p9 }
  0x60   : > { %2365 = shalt.err (!%p2362_p3)
}
  0x61   : > { %s2366_s8 = scalar_lea.vmem %s208_s11, 768  ;;  %p3373_p8 = pmov %p3372_p2 }
  0x62   : > { %p2367_p6 = scmp.ne.s32.totalorder %s208_s11, %s2366_s8  ;;  %p2374_p5 = scmp.lt.s32.totalorder %s208_s11, %s208_s11 }
  0x63   : > { %p2375_p12 = scmp.lt.s32.totalorder %s2366_s8, %s2366_s8 }
  0x64   : > { %p2369_p1 = pnand %p2367_p6, %p3373_p8 }
  0x65   : > { %p2376_p13 = por %p2375_p12, %p2374_p5 }
  0x66   : > { %p2370_p4 = pneg %p2369_p1 }
  0x68   : > { %p2377_p2 = pnand %p2376_p13, %p2370_p4 }
  0x6a   : > { %2380 = shalt.err (!%p2377_p2)
}
  0x6b   : > { %s2541_s1 = smov 384   ;;  %s2542_s5 = smov 24  }
  0x6c   : > { %2198 = dma.hbm_to_vmem [thread:$0]  (!%p3371_p0), %s3336_s0, 768, %s208_s11, [#allocation4], %s2541_s1, %s2541_s1, %s2542_s5  }
  0x6d   : > { %s1692_s28 = sshll.u32 %s2529_s22, 6  ;;  %s257_s18 = scalar_lea.vmem [#allocation8], %s1675_s12 }
  0x6e   : > { %s2750_s16 = scalar_lea.hbm %s3338_s2, %s1692_s28  ;;  %s265_s29 = sshll.u32 %s257_s18, 4  ;;  %s266_s29 = int_to_ptr.vmem [resolvable:$true] %s265_s29 }
  0x6f   : > { %s2381_s6 = scalar_lea.hbm %s2750_s16, 64  ;;  %p3374_p13 = scmp.ne.s32.totalorder %s3369_s10, 0 }
  0x70   : > { %p2382_p12 = scmp.ne.s32.totalorder %s2750_s16, %s2381_s6  ;;  %s2386_s30 = scalar_lea.hbm %s3338_s2, 192 }
  0x71   : > { %p2387_p0 = scmp.lt.u32.totalorder %s2750_s16, %s3338_s2  ;;  %p2388_p9 = scmp.lt.u32.totalorder %s2386_s30, %s2381_s6 }
  0x72   : > { %p2384_p11 = pnand %p2382_p12, %p3374_p13  ;;  %p2390_p3 = scmp.lt.u32.totalorder %s2381_s6, %s2750_s16 }
  0x73   : > { %p2389_p10 = por %p2388_p9, %p2387_p0 }
  0x74   : > { %p2385_p7 = pneg %p2384_p11 }
  0x75   : > { %p2391_p6 = por %p2390_p3, %p2389_p10 }
  0x77   : > { %p2392_p8 = pnand %p2391_p6, %p2385_p7 }
  0x79   : > { %2395 = shalt.err (!%p2392_p8)
}
  0x7a   : > { %s2396_s12 = scalar_lea.vmem %s266_s29, 64  ;;  %s2543_s4 = smov [#allocation8]  }
  0x7b   : > { %p2397_p1 = scmp.ne.s32.totalorder %s266_s29, %s2396_s12  ;;  %s2401_s21 = sshll.u32 %s2543_s4, 4  ;;  %s2402_s21 = int_to_ptr.vmem [resolvable:$false] %s2401_s21 }
  0x7c   : > { %s2403_s28 = scalar_lea.vmem %s2402_s21, 128  ;;  %p2404_p2 = scmp.lt.s32.totalorder %s266_s29, %s2402_s21 }
  0x7d   : > { %p2399_p4 = pnand %p2397_p1, %p3374_p13  ;;  %p2405_p12 = scmp.lt.s32.totalorder %s2403_s28, %s2396_s12 }
  0x7f   : > { %p2400_p5 = pneg %p2399_p4  ;;  %p2406_p11 = por %p2405_p12, %p2404_p2 }
  0x81   : > { %p2407_p0 = pnand %p2406_p11, %p2400_p5 }
  0x83   : > { %2410 = shalt.err (!%p2407_p0)
}
  0x84   : > { %p3375_p9 = scmp.ne.s32.totalorder %s3363_s7, 0  ;;  %s2175_s13 = smul.u32 24576, %s2529_s22 }
  0x85   : > { %s276_s15 = scalar_lea.vmem [#allocation9], %s2669_s9  ;;  %s3376_s30 = sand.u32 1, %s2533_s23  }
  0x86   : > { %2208 = dma.hbm_to_vmem [thread:$0]  (!%p3375_p9), %s2750_s16, 64, %s266_s29, %s2691_s17  }
  0x87   : > { %s284_s18 = sshll.u32 %s276_s15, 4  ;;  %s2775_s11 = scalar_lea.hbm %s3339_s3, %s2175_s13  ;;  %s2777_s18 = int_to_ptr.vmem [resolvable:$true] %s284_s18 }
  0x88   : > { %s2781_s25 = scalar_lea.sflag [#allocation10], %s3376_s30  ;;  %s2411_s8 = scalar_lea.hbm %s2775_s11, 24576 }
  0x89   : > { %p2412_p7 = scmp.ne.s32.totalorder %s2775_s11, %s2411_s8  ;;  %s2416_s16 = scalar_lea.hbm %s3339_s3, 73728 }
  0x8a   : > { %p2417_p6 = scmp.lt.u32.totalorder %s2775_s11, %s3339_s3  ;;  %p2418_p8 = scmp.lt.u32.totalorder %s2416_s16, %s2411_s8 }
  0x8b   : > { %p2414_p10 = pnand %p2412_p7, %p3374_p13  ;;  %p2420_p4 = scmp.lt.u32.totalorder %s2411_s8, %s2775_s11 }
  0x8c   : > { %p2419_p1 = por %p2418_p8, %p2417_p6 }
  0x8d   : > { %p2415_p3 = pneg %p2414_p10 }
  0x8e   : > { %p2421_p5 = por %p2420_p4, %p2419_p1 }
  0x90   : > { %p2422_p2 = pnand %p2421_p5, %p2415_p3 }
  0x92   : > { %2425 = shalt.err (!%p2422_p2)
}
  0x93   : > { %s2426_s4 = scalar_lea.vmem %s2777_s18, 24576  ;;  %s2544_s21 = smov [#allocation9]  }
  0x94   : > { %p2427_p12 = scmp.ne.s32.totalorder %s2777_s18, %s2426_s4  ;;  %s2431_s28 = sshll.u32 %s2544_s21, 4  ;;  %s2432_s28 = int_to_ptr.vmem [resolvable:$false] %s2431_s28 }
  0x95   : > { %s2433_s13 = scalar_lea.vmem %s2432_s28, 49152  ;;  %p2434_p7 = scmp.lt.s32.totalorder %s2777_s18, %s2432_s28 }
  0x96   : > { %p2429_p11 = pnand %p2427_p12, %p3374_p13  ;;  %p2435_p10 = scmp.lt.s32.totalorder %s2433_s13, %s2426_s4 }
  0x98   : > { %p2430_p0 = pneg %p2429_p11  ;;  %p2436_p6 = por %p2435_p10, %p2434_p7 }
  0x9a   : > { %p2437_p8 = pnand %p2436_p6, %p2430_p0 }
  0x9c   : > { %2440 = shalt.err (!%p2437_p8)
}
  0x9d   : > { %2211 = dma.hbm_to_vmem [thread:$0]  (!%p3375_p9), %s2775_s11, 24576, %s2777_s18, %s2781_s25, %s2541_s1, %s2541_s1, %s2542_s5  }
  0x9e   : > { %p3377_p13 = scmp.ne.s32.totalorder %s3361_s27, 0 }
  0x9f   : > { %p3378_p3 = scmp.eq.s32.totalorder (!%p3377_p13), %s2609_s24, 0 }
  0xa0   : > { %296 = sbr.rel (%p3377_p13) target bundleno = 833 (0x341), region = 40 }
  0xa7   : > { %2492 = dma.done.wait (%p3378_p3), [#allocation4], 768   ;;  %p3379_p1 = pmov %p3378_p3 }
  0xa8   : > { %s302_s7 = sand.u32 1, %s2609_s24   ;;  %s304_s10 = sand.u32 1, %s2517_s19  }
  0xa9   : > { %2494 = vsyncadd (%p3379_p1), [#allocation4], 4294966528  ;;  %s2176_s15 = smul.u32 1536, %s304_s10  ;;  %s303_s6 = scalar_lea.sflag [#allocation7], %s302_s7 }
  0xaa   : > { %p3380_p4 = scmp.ne.s32.totalorder %s3360_s26, 0 }
  0xab   : > { %s2816_s14 = scalar_lea.vmem [#allocation6], %s2176_s15 }
  0xac   : > { %2496 = dma.done.wait (%p3380_p4), %s303_s6, 24640  }
  0xad   : > { %2498 = vsyncadd (%p3380_p4), %s303_s6, 4294942656  ;;  %s2822_s27 = sshll.u32 %s304_s10, 2  ;;  %s321_s5 = scalar_lea.sflag [#allocation10], %s302_s7 }
  0xae   : > { %s315_s1 = scalar_lea.vmem [#allocation8], %s2822_s27  ;;  %s2825_s18 = scalar_lea.vmem [#allocation9], %s2176_s15 }
  0xaf   : > { %2500 = dma.done.wait (%p3380_p4), %s321_s5, 24576  }
  0xb0   : > { %2502 = vsyncadd (%p3380_p4), %s321_s5, 4294942720  ;;  %p3381_p9 = pmov %p3379_p1 }
  0xb1   : > { %p3382_p5 = pmov %p3379_p1 }
  0xb2   : > { %2504 = dma.done.wait (%p3381_p9), [#allocation10], 48  }
  0xb3   : > { %2506 = vsyncadd (%p3382_p5), [#allocation10], 4294967248  ;;  %s3383_s11 = sld [smem:[#allocation18_spill]] }
  0xb9   : > { %p1685_p2 = scmp.ne.s32.totalorder %s3383_s11, 0 }
  0xba   : > { %v2545_v0 = vmov (!%p1685_p2), 0.0  }
  0xbb   : > { %368 = sbr.rel (%p1685_p2) target bundleno = 194 (0xc2), region = 64  ;;  %369 = vst [vmem:[#allocation2] sm:$0xff] (!%p1685_p2), %v2545_v0  ;;  %370 = vst [vmem:[#allocation2 + $0x8] sm:$0xff] (!%p1685_p2), %v2545_v0 }
  0xbc   : > { %371 = vst [vmem:[#allocation2 + $0x10] sm:$0xff] (!%p1685_p2), %v2545_v0  ;;  %372 = vst [vmem:[#allocation2 + $0x18] sm:$0xff] (!%p1685_p2), %v2545_v0 }
  0xbd   : > { %373 = vst [vmem:[#allocation2 + $0x20] sm:$0xff] (!%p1685_p2), %v2545_v0  ;;  %374 = vst [vmem:[#allocation2 + $0x28] sm:$0xff] (!%p1685_p2), %v2545_v0 }
  0xc2 PF: > { %v382_v1 = vld [vmem:[%s2816_s14 + $0x8] sm:$0xff]  ;;  %v381_v6 = vld [vmem:[%s2816_s14] sm:$0xff]  ;;  %v2546_v8 = vmov 0.0   ;;  %s3384_s26 = sld [smem:[#allocation18_spill]] }
  0xc3   : > { %v386_v2 = vld [vmem:[%s2816_s14 + $0x28] sm:$0xff]  ;;  %v385_v7 = vld [vmem:[%s2816_s14 + $0x20] sm:$0xff]  ;;  %736 = vmatprep.mubr.f32.mxu1 %v2546_v8 }
  0xc4   : > { %v510_v3 = vld [vmem:[%s2816_s14 + $0x408] sm:$0xff]  ;;  %v1769_v4 = vpack.c.bf16 %v386_v2, %v382_v1  ;;  %v1771_v10 = vpack.c.bf16 %v385_v7, %v381_v6  ;;  %v509_v11 = vld [vmem:[%s2816_s14 + $0x400] sm:$0xff] }
  0xc5   : > { %v514_v5 = vld [vmem:[%s2816_s14 + $0x428] sm:$0xff]  ;;  %v513_v12 = vld [vmem:[%s2816_s14 + $0x420] sm:$0xff] }
  0xc6   : > { %v1833_v9 = vpack.c.bf16 %v514_v5, %v510_v3  ;;  %v390_v13 = vld [vmem:[%s2816_s14 + $0x48] sm:$0xff]  ;;  %1770 = vmatprep.subr.bf16.mxu0 %v1769_v4  ;;  %v1835_v14 = vpack.c.bf16 %v513_v12, %v509_v11  ;;  %v389_v20 = vld [vmem:[%s2816_s14 + $0x40] sm:$0xff] }
  0xc7   : > { %v394_v15 = vld [vmem:[%s2816_s14 + $0x68] sm:$0xff]  ;;  %1772 = vmatpush1.bf16.msra.mxu0 %v1771_v10  ;;  %v393_v21 = vld [vmem:[%s2816_s14 + $0x60] sm:$0xff] }
  0xc8   : > { %v518_v16 = vld [vmem:[%s2816_s14 + $0x448] sm:$0xff]  ;;  %1834 = vmatprep.subr.bf16.mxu1 %v1833_v9  ;;  %v1773_v18 = vpack.c.bf16 %v394_v15, %v390_v13  ;;  %v517_v22 = vld [vmem:[%s2816_s14 + $0x440] sm:$0xff]  ;;  %v1775_v23 = vpack.c.bf16 %v393_v21, %v389_v20  ;;  %p1686_p12 = scmp.ne.s32.totalorder %s3384_s26, 2 }
  0xc9   : > { %v522_v17 = vld [vmem:[%s2816_s14 + $0x468] sm:$0xff]  ;;  %1836 = vmatpush1.bf16.msra.mxu1 %v1835_v14  ;;  %v521_v24 = vld [vmem:[%s2816_s14 + $0x460] sm:$0xff] }
  0xca   : > { %v1837_v19 = vpack.c.bf16 %v522_v17, %v518_v16  ;;  %v398_v25 = vld [vmem:[%s2816_s14 + $0x88] sm:$0xff]  ;;  %1774 = vmatprep.subr.bf16.mxu0 %v1773_v18  ;;  %v1839_v27 = vpack.c.bf16 %v521_v24, %v517_v22  ;;  %v397_v31 = vld [vmem:[%s2816_s14 + $0x80] sm:$0xff] }
  0xcb   : > { %v402_v26 = vld [vmem:[%s2816_s14 + $0xa8] sm:$0xff]  ;;  %v401_v33 = vld [vmem:[%s2816_s14 + $0xa0] sm:$0xff]  ;;  %1776 = vmatpush1.bf16.msra.mxu0 %v1775_v23 }
  0xcc   : > { %1838 = vmatprep.subr.bf16.mxu1 %v1837_v19  ;;  %v1777_v28 = vpack.c.bf16 %v402_v26, %v398_v25  ;;  %v526_v29 = vld [vmem:[%s2816_s14 + $0x488] sm:$0xff]  ;;  %v525_v34 = vld [vmem:[%s2816_s14 + $0x480] sm:$0xff]  ;;  %v1779_v36 = vpack.c.bf16 %v401_v33, %v397_v31 }
  0xcd   : > { %v530_v30 = vld [vmem:[%s2816_s14 + $0x4a8] sm:$0xff]  ;;  %v529_v35 = vld [vmem:[%s2816_s14 + $0x4a0] sm:$0xff]  ;;  %1840 = vmatpush1.bf16.msra.mxu1 %v1839_v27 }
  0xce   : > { %v1841_v32 = vpack.c.bf16 %v530_v30, %v526_v29  ;;  %v406_v37 = vld [vmem:[%s2816_s14 + $0xc8] sm:$0xff]  ;;  %1778 = vmatprep.subr.bf16.mxu0 %v1777_v28  ;;  %v1843_v40 = vpack.c.bf16 %v529_v35, %v525_v34  ;;  %v405_v43 = vld [vmem:[%s2816_s14 + $0xc0] sm:$0xff]  ;;  %v384_v35 = vld [vmem:[%s2816_s14 + $0x18] sm:$0xff] }
  0xcf   : > { %v410_v38 = vld [vmem:[%s2816_s14 + $0xe8] sm:$0xff]  ;;  %v409_v44 = vld [vmem:[%s2816_s14 + $0xe0] sm:$0xff]  ;;  %1780 = vmatpush1.bf16.msra.mxu0 %v1779_v36  ;;  %v388_v36 = vld [vmem:[%s2816_s14 + $0x38] sm:$0xff] }
  0xd0   : > { %v534_v39 = vld [vmem:[%s2816_s14 + $0x4c8] sm:$0xff]  ;;  %v1781_v41 = vpack.c.bf16 %v410_v38, %v406_v37  ;;  %1842 = vmatprep.subr.bf16.mxu1 %v1841_v32  ;;  %v533_v46 = vld [vmem:[%s2816_s14 + $0x4c0] sm:$0xff]  ;;  %v1783_v52 = vpack.c.bf16 %v409_v44, %v405_v43  ;;  %v1865_v43 = vpack.c.bf16 %v388_v36, %v384_v35  ;;  %v387_v44 = vld [vmem:[%s2816_s14 + $0x30] sm:$0xff] }
  0xd1   : > { %v538_v42 = vld [vmem:[%s2816_s14 + $0x4e8] sm:$0xff]  ;;  %v537_v47 = vld [vmem:[%s2816_s14 + $0x4e0] sm:$0xff]  ;;  %1844 = vmatpush1.bf16.msra.mxu1 %v1843_v40  ;;  %v428_v35 = vld [vmem:[%s2816_s14 + $0x178] sm:$0xff] }
  0xd2   : > { %v1845_v45 = vpack.c.bf16 %v538_v42, %v534_v39  ;;  %v414_v48 = vld [vmem:[%s2816_s14 + $0x108] sm:$0xff]  ;;  %1782 = vmatprep.subr.bf16.mxu0 %v1781_v41  ;;  %v1847_v53 = vpack.c.bf16 %v537_v47, %v533_v46  ;;  %v413_v55 = vld [vmem:[%s2816_s14 + $0x100] sm:$0xff]  ;;  %v383_v42 = vld [vmem:[%s2816_s14 + $0x10] sm:$0xff] }
  0xd3   : > { %v418_v49 = vld [vmem:[%s2816_s14 + $0x128] sm:$0xff]  ;;  %v417_v56 = vld [vmem:[%s2816_s14 + $0x120] sm:$0xff]  ;;  %1784 = vmatpush1.bf16.msra.mxu0 %v1783_v52  ;;  %v392_v47 = vld [vmem:[%s2816_s14 + $0x58] sm:$0xff] }
  0xd4   : > { %v542_v50 = vld [vmem:[%s2816_s14 + $0x508] sm:$0xff]  ;;  %v1785_v54 = vpack.c.bf16 %v418_v49, %v414_v48  ;;  %v541_v57 = vld [vmem:[%s2816_s14 + $0x500] sm:$0xff]  ;;  %1846 = vmatprep.subr.bf16.mxu1 %v1845_v45  ;;  %v1787_v0 = vpack.c.bf16 %v417_v56, %v413_v55  ;;  %v396_v48 = vld [vmem:[%s2816_s14 + $0x78] sm:$0xff] }
  0xd5   : > { %v546_v51 = vld [vmem:[%s2816_s14 + $0x528] sm:$0xff]  ;;  %v545_v59 = vld [vmem:[%s2816_s14 + $0x520] sm:$0xff]  ;;  %1848 = vmatpush1.bf16.msra.mxu1 %v1847_v53  ;;  %v391_v55 = vld [vmem:[%s2816_s14 + $0x50] sm:$0xff]  ;;  %v1869_v56 = vpack.c.bf16 %v396_v48, %v392_v47 }
  0xd6   : > { %v1849_v58 = vpack.c.bf16 %v546_v51, %v542_v50  ;;  %v422_v60 = vld [vmem:[%s2816_s14 + $0x148] sm:$0xff]  ;;  %1786 = vmatprep.subr.bf16.mxu0 %v1785_v54  ;;  %v1851_v1 = vpack.c.bf16 %v545_v59, %v541_v57  ;;  %v421_v3 = vld [vmem:[%s2816_s14 + $0x140] sm:$0xff]  ;;  %v1867_v51 = vpack.c.bf16 %v387_v44, %v383_v42  ;;  %v395_v57 = vld [vmem:[%s2816_s14 + $0x70] sm:$0xff] }
  0xd7   : > { %v426_v61 = vld [vmem:[%s2816_s14 + $0x168] sm:$0xff]  ;;  %v425_v4 = vld [vmem:[%s2816_s14 + $0x160] sm:$0xff]  ;;  %1788 = vmatpush1.bf16.msra.mxu0 %v1787_v0  ;;  %v2949_v36 = vld [vmem:[#allocation3 + $0x28] sm:$0xff] }
  0xd8   : > { %v550_v62 = vld [vmem:[%s2816_s14 + $0x548] sm:$0xff]  ;;  %v1789_v2 = vpack.c.bf16 %v426_v61, %v422_v60  ;;  %v549_v5 = vld [vmem:[%s2816_s14 + $0x540] sm:$0xff]  ;;  %1850 = vmatprep.subr.bf16.mxu1 %v1849_v58  ;;  %v1791_v13 = vpack.c.bf16 %v425_v4, %v421_v3  ;;  %v400_v60 = vld [vmem:[%s2816_s14 + $0x98] sm:$0xff] }
  0xd9   : > { %v554_v63 = vld [vmem:[%s2816_s14 + $0x568] sm:$0xff]  ;;  %v553_v7 = vld [vmem:[%s2816_s14 + $0x560] sm:$0xff]  ;;  %1852 = vmatpush1.bf16.msra.mxu1 %v1851_v1  ;;  %v404_v61 = vld [vmem:[%s2816_s14 + $0xb8] sm:$0xff] }
  0xda   : > { %v1853_v6 = vpack.c.bf16 %v554_v63, %v550_v62  ;;  %v430_v9 = vld [vmem:[%s2816_s14 + $0x188] sm:$0xff]  ;;  %1790 = vmatprep.subr.bf16.mxu0 %v1789_v2  ;;  %v1855_v14 = vpack.c.bf16 %v553_v7, %v549_v5  ;;  %v429_v16 = vld [vmem:[%s2816_s14 + $0x180] sm:$0xff]  ;;  %v1871_v63 = vpack.c.bf16 %v395_v57, %v391_v55  ;;  %v399_v3 = vld [vmem:[%s2816_s14 + $0x90] sm:$0xff]  ;;  %v1873_v4 = vpack.c.bf16 %v404_v61, %v400_v60 }
  0xdb   : > { %v434_v10 = vld [vmem:[%s2816_s14 + $0x1a8] sm:$0xff]  ;;  %v433_v17 = vld [vmem:[%s2816_s14 + $0x1a0] sm:$0xff]  ;;  %1792 = vmatpush1.bf16.msra.mxu0 %v1791_v13  ;;  %v403_v5 = vld [vmem:[%s2816_s14 + $0xb0] sm:$0xff] }
  0xdc   : > { %v558_v11 = vld [vmem:[%s2816_s14 + $0x588] sm:$0xff]  ;;  %v1793_v15 = vpack.c.bf16 %v434_v10, %v430_v9  ;;  %v557_v18 = vld [vmem:[%s2816_s14 + $0x580] sm:$0xff]  ;;  %1854 = vmatprep.subr.bf16.mxu1 %v1853_v6  ;;  %v1795_v25 = vpack.c.bf16 %v433_v17, %v429_v16  ;;  %v408_v9 = vld [vmem:[%s2816_s14 + $0xd8] sm:$0xff] }
  0xdd   : > { %v562_v12 = vld [vmem:[%s2816_s14 + $0x5a8] sm:$0xff]  ;;  %v561_v20 = vld [vmem:[%s2816_s14 + $0x5a0] sm:$0xff]  ;;  %1856 = vmatpush1.bf16.msra.mxu1 %v1855_v14  ;;  %v412_v10 = vld [vmem:[%s2816_s14 + $0xf8] sm:$0xff] }
  0xde   : > { %v1857_v19 = vpack.c.bf16 %v562_v12, %v558_v11  ;;  %v438_v21 = vld [vmem:[%s2816_s14 + $0x1c8] sm:$0xff]  ;;  %1794 = vmatprep.subr.bf16.mxu0 %v1793_v15  ;;  %v1859_v26 = vpack.c.bf16 %v561_v20, %v557_v18  ;;  %v437_v28 = vld [vmem:[%s2816_s14 + $0x1c0] sm:$0xff]  ;;  %v1875_v12 = vpack.c.bf16 %v403_v5, %v399_v3  ;;  %v407_v16 = vld [vmem:[%s2816_s14 + $0xd0] sm:$0xff]  ;;  %v1877_v17 = vpack.c.bf16 %v412_v10, %v408_v9 }
  0xdf   : > { %v442_v22 = vld [vmem:[%s2816_s14 + $0x1e8] sm:$0xff]  ;;  %v441_v29 = vld [vmem:[%s2816_s14 + $0x1e0] sm:$0xff]  ;;  %1796 = vmatpush1.bf16.msra.mxu0 %v1795_v25  ;;  %v411_v18 = vld [vmem:[%s2816_s14 + $0xf0] sm:$0xff] }
  0xe0   : > { %v566_v23 = vld [vmem:[%s2816_s14 + $0x5c8] sm:$0xff]  ;;  %v1797_v27 = vpack.c.bf16 %v442_v22, %v438_v21  ;;  %v565_v30 = vld [vmem:[%s2816_s14 + $0x5c0] sm:$0xff]  ;;  %1858 = vmatprep.subr.bf16.mxu1 %v1857_v19  ;;  %v1799_v37 = vpack.c.bf16 %v441_v29, %v437_v28  ;;  %v416_v21 = vld [vmem:[%s2816_s14 + $0x118] sm:$0xff]  ;;  %v1879_v25 = vpack.c.bf16 %v411_v18, %v407_v16 }
  0xe1   : > { %v570_v24 = vld [vmem:[%s2816_s14 + $0x5e8] sm:$0xff]  ;;  %v569_v32 = vld [vmem:[%s2816_s14 + $0x5e0] sm:$0xff]  ;;  %1860 = vmatpush1.bf16.msra.mxu1 %v1859_v26  ;;  %v420_v22 = vld [vmem:[%s2816_s14 + $0x138] sm:$0xff] }
  0xe2   : > { %v1861_v31 = vpack.c.bf16 %v570_v24, %v566_v23  ;;  %v446_v33 = vld [vmem:[%s2816_s14 + $0x208] sm:$0xff]  ;;  %1798 = vmatprep.subr.bf16.mxu0 %v1797_v27  ;;  %v1863_v38 = vpack.c.bf16 %v569_v32, %v565_v30  ;;  %v445_v40 = vld [vmem:[%s2816_s14 + $0x200] sm:$0xff]  ;;  %v376_v23 = vld [vmem:[#allocation3 + $0x8] sm:$0xff]  ;;  %v1881_v30 = vpack.c.bf16 %v420_v22, %v416_v21 }
  0xe3   : > { %v450_v34 = vld [vmem:[%s2816_s14 + $0x228] sm:$0xff]  ;;  %v449_v41 = vld [vmem:[%s2816_s14 + $0x220] sm:$0xff]  ;;  %1800 = vmatpush1.bf16.msra.mxu0 %v1799_v37  ;;  %659 = vmatprep.mubr.f32.mxu0 %v376_v23  ;;  %v415_v29 = vld [vmem:[%s2816_s14 + $0x110] sm:$0xff] }
  0xe4   : > { %v1801_v39 = vpack.c.bf16 %v450_v34, %v446_v33  ;;  %1862 = vmatprep.subr.bf16.mxu1 %v1861_v31  ;;  %v454_v45 = vld [vmem:[%s2816_s14 + $0x248] sm:$0xff]  ;;  %v2913_v49 = vld [vmem:[#allocation3 + $0x10] sm:$0xff]  ;;  %v1803_v50 = vpack.c.bf16 %v449_v41, %v445_v40  ;;  %v419_v31 = vld [vmem:[%s2816_s14 + $0x130] sm:$0xff] }
  0xe5   : > { %v458_v46 = vld [vmem:[%s2816_s14 + $0x268] sm:$0xff]  ;;  %1864 = vmatpush1.bf16.msra.mxu1 %v1863_v38  ;;  %v453_v53 = vld [vmem:[%s2816_s14 + $0x240] sm:$0xff]  ;;  %v424_v34 = vld [vmem:[%s2816_s14 + $0x158] sm:$0xff]  ;;  %v1883_v38 = vpack.c.bf16 %v419_v31, %v415_v29 }
  0xe6   : > { %1802 = vmatprep.subr.bf16.mxu0 %v1801_v39  ;;  %v1805_v52 = vpack.c.bf16 %v458_v46, %v454_v45  ;;  %v457_v54 = vld [vmem:[%s2816_s14 + $0x260] sm:$0xff]  ;;  %1866 = vmatprep.subr.bf16.mxu1 %v1865_v43  ;;  %v462_v58 = vld [vmem:[%s2816_s14 + $0x288] sm:$0xff]  ;;  %v423_v42 = vld [vmem:[%s2816_s14 + $0x150] sm:$0xff]  ;;  %v1885_v43 = vpack.c.bf16 %v428_v35, %v424_v34 }
  0xe7   : > { %v466_v59 = vld [vmem:[%s2816_s14 + $0x2a8] sm:$0xff]  ;;  %1804 = vmatpush1.bf16.msra.mxu0 %v1803_v50  ;;  %v1807_v62 = vpack.c.bf16 %v457_v54, %v453_v53  ;;  %v461_v1 = vld [vmem:[%s2816_s14 + $0x280] sm:$0xff]  ;;  %v427_v44 = vld [vmem:[%s2816_s14 + $0x170] sm:$0xff] }
  0xe8   : > { %737 = vmatmul.mubr.f32.vlgmr.msra.gmra.mrb[0].mxu1 %v2913_v49  ;;  %1806 = vmatprep.subr.bf16.mxu0 %v1805_v52  ;;  %v1809_v0 = vpack.c.bf16 %v466_v59, %v462_v58  ;;  %v465_v2 = vld [vmem:[%s2816_s14 + $0x2a0] sm:$0xff]  ;;  %v470_v6 = vld [vmem:[%s2816_s14 + $0x2c8] sm:$0xff]  ;;  %v432_v47 = vld [vmem:[%s2816_s14 + $0x198] sm:$0xff] }
  0xe9   : > { %1868 = vmatpush1.bf16.msra.mxu1 %v1867_v51  ;;  %v474_v7 = vld [vmem:[%s2816_s14 + $0x2e8] sm:$0xff]  ;;  %742 = vmatprep.mubr.f32.mxu1 %v2546_v8  ;;  %v1811_v11 = vpack.c.bf16 %v465_v2, %v461_v1  ;;  %v469_v14 = vld [vmem:[%s2816_s14 + $0x2c0] sm:$0xff]  ;;  %v436_v48 = vld [vmem:[%s2816_s14 + $0x1b8] sm:$0xff]  ;;  %v1887_v51 = vpack.c.bf16 %v427_v44, %v423_v42 }
  0xea   : > { %1870 = vmatprep.subr.bf16.mxu1 %v1869_v56  ;;  %v1813_v13 = vpack.c.bf16 %v474_v7, %v470_v6  ;;  %v473_v15 = vld [vmem:[%s2816_s14 + $0x2e0] sm:$0xff]  ;;  %v478_v19 = vld [vmem:[%s2816_s14 + $0x308] sm:$0xff]  ;;  %v431_v55 = vld [vmem:[%s2816_s14 + $0x190] sm:$0xff]  ;;  %v1889_v56 = vpack.c.bf16 %v436_v48, %v432_v47 }
  0xeb   : > { %1808 = vmatpush1.bf16.msra.mxu0 %v1807_v62  ;;  %v482_v20 = vld [vmem:[%s2816_s14 + $0x328] sm:$0xff]  ;;  %v1815_v24 = vpack.c.bf16 %v473_v15, %v469_v14  ;;  %v477_v27 = vld [vmem:[%s2816_s14 + $0x300] sm:$0xff]  ;;  %v435_v57 = vld [vmem:[%s2816_s14 + $0x1b0] sm:$0xff] }
  0xec   : > { %1810 = vmatprep.subr.bf16.mxu0 %v1809_v0  ;;  %v1817_v26 = vpack.c.bf16 %v482_v20, %v478_v19  ;;  %v481_v28 = vld [vmem:[%s2816_s14 + $0x320] sm:$0xff]  ;;  %v486_v32 = vld [vmem:[%s2816_s14 + $0x348] sm:$0xff]  ;;  %743 = vmatmul.mubr.f32.gmra.mrb[2].mxu1 %v2949_v36  ;;  %v440_v60 = vld [vmem:[%s2816_s14 + $0x1d8] sm:$0xff] }
  0xed   : > { %1872 = vmatpush1.bf16.msra.mxu1 %v1871_v63  ;;  %v490_v33 = vld [vmem:[%s2816_s14 + $0x368] sm:$0xff]  ;;  %v1819_v37 = vpack.c.bf16 %v481_v28, %v477_v27  ;;  %v485_v40 = vld [vmem:[%s2816_s14 + $0x340] sm:$0xff]  ;;  %813 = vmatprep.mubr.f32.mxu1 %v376_v23  ;;  %v444_v61 = vld [vmem:[%s2816_s14 + $0x1f8] sm:$0xff]  ;;  %v1891_v63 = vpack.c.bf16 %v435_v57, %v431_v55 }
  0xee   : > { %1874 = vmatprep.subr.bf16.mxu1 %v1873_v4  ;;  %v1821_v39 = vpack.c.bf16 %v490_v33, %v486_v32  ;;  %v489_v41 = vld [vmem:[%s2816_s14 + $0x360] sm:$0xff]  ;;  %v494_v45 = vld [vmem:[%s2816_s14 + $0x388] sm:$0xff]  ;;  %v1893_v3 = vpack.c.bf16 %v444_v61, %v440_v60  ;;  %v439_v4 = vld [vmem:[%s2816_s14 + $0x1d0] sm:$0xff] }
  0xef   : > { %1812 = vmatpush1.bf16.msra.mxu0 %v1811_v11  ;;  %v498_v46 = vld [vmem:[%s2816_s14 + $0x3a8] sm:$0xff]  ;;  %v1823_v50 = vpack.c.bf16 %v489_v41, %v485_v40  ;;  %v493_v53 = vld [vmem:[%s2816_s14 + $0x380] sm:$0xff]  ;;  %v443_v5 = vld [vmem:[%s2816_s14 + $0x1f0] sm:$0xff] }
  0xf0   : > { %1814 = vmatprep.subr.bf16.mxu0 %v1813_v13  ;;  %v1825_v52 = vpack.c.bf16 %v498_v46, %v494_v45  ;;  %v497_v54 = vld [vmem:[%s2816_s14 + $0x3a0] sm:$0xff]  ;;  %v502_v58 = vld [vmem:[%s2816_s14 + $0x3c8] sm:$0xff]  ;;  %v448_v6 = vld [vmem:[%s2816_s14 + $0x218] sm:$0xff]  ;;  %v1895_v10 = vpack.c.bf16 %v443_v5, %v439_v4 }
  0xf1   : > { %1876 = vmatpush1.bf16.msra.mxu1 %v1875_v12  ;;  %v506_v59 = vld [vmem:[%s2816_s14 + $0x3e8] sm:$0xff]  ;;  %v1827_v62 = vpack.c.bf16 %v497_v54, %v493_v53  ;;  %v501_v1 = vld [vmem:[%s2816_s14 + $0x3c0] sm:$0xff]  ;;  %v452_v7 = vld [vmem:[%s2816_s14 + $0x238] sm:$0xff] }
  0xf2   : > { %1878 = vmatprep.subr.bf16.mxu1 %v1877_v17  ;;  %v1829_v0 = vpack.c.bf16 %v506_v59, %v502_v58  ;;  %v505_v2 = vld [vmem:[%s2816_s14 + $0x3e0] sm:$0xff]  ;;  %v1897_v11 = vpack.c.bf16 %v452_v7, %v448_v6  ;;  %v447_v12 = vld [vmem:[%s2816_s14 + $0x210] sm:$0xff]  ;;  %v456_v14 = vld [vmem:[%s2816_s14 + $0x258] sm:$0xff] }
  0xf3   : > { %1816 = vmatpush1.bf16.msra.mxu0 %v1815_v24  ;;  %v1831_v9 = vpack.c.bf16 %v505_v2, %v501_v1  ;;  %v451_v13 = vld [vmem:[%s2816_s14 + $0x230] sm:$0xff]  ;;  %v460_v15 = vld [vmem:[%s2816_s14 + $0x278] sm:$0xff]  ;;  %v985_v23 = vld [vmem:[%s2825_s18 + $0x20] sm:$0xff] }
  0xf4   : > { %1818 = vmatprep.subr.bf16.mxu0 %v1817_v26  ;;  %v2978_v16 = vld [vmem:[#allocation3] sm:$0xff]  ;;  %v1899_v17 = vpack.c.bf16 %v451_v13, %v447_v12  ;;  %v1901_v21 = vpack.c.bf16 %v460_v15, %v456_v14  ;;  %v981_v24 = vld [vmem:[%s2825_s18] sm:$0xff]  ;;  %v468_v26 = vld [vmem:[%s2816_s14 + $0x2b8] sm:$0xff] }
  0xf5   : > { %1880 = vmatpush1.bf16.msra.mxu1 %v1879_v25  ;;  %v2980_v18 = vld [vmem:[#allocation3 + $0x20] sm:$0xff]  ;;  %v464_v25 = vld [vmem:[%s2816_s14 + $0x298] sm:$0xff]  ;;  %v984_v28 = vld [vmem:[%s2825_s18 + $0x18] sm:$0xff] }
  0xf6   : > { %1882 = vmatprep.subr.bf16.mxu1 %v1881_v30  ;;  %v455_v19 = vld [vmem:[%s2816_s14 + $0x250] sm:$0xff]  ;;  %v2992_v29 = vld [vmem:[#allocation3 + $0x18] sm:$0xff]  ;;  %v1963_v30 = vpack.c.bf16 %v984_v28, %v981_v24  ;;  %v1905_v32 = vpack.c.bf16 %v468_v26, %v464_v25  ;;  %v472_v35 = vld [vmem:[%s2816_s14 + $0x2d8] sm:$0xff] }
  0xf7   : > { %1820 = vmatpush1.bf16.msra.mxu0 %v1819_v37  ;;  %v459_v20 = vld [vmem:[%s2816_s14 + $0x270] sm:$0xff]  ;;  %v476_v37 = vld [vmem:[%s2816_s14 + $0x2f8] sm:$0xff] }
  0xf8   : > { %1822 = vmatprep.subr.bf16.mxu0 %v1821_v39  ;;  %v982_v22 = vld [vmem:[%s2825_s18 + $0x8] sm:$0xff]  ;;  %v1903_v31 = vpack.c.bf16 %v459_v20, %v455_v19  ;;  %v1909_v39 = vpack.c.bf16 %v476_v37, %v472_v35  ;;  %v480_v42 = vld [vmem:[%s2816_s14 + $0x318] sm:$0xff] }
  0xf9   : > { %1884 = vmatpush1.bf16.msra.mxu1 %v1883_v38  ;;  %v1961_v27 = vpack.c.bf16 %v985_v23, %v982_v22  ;;  %v463_v33 = vld [vmem:[%s2816_s14 + $0x290] sm:$0xff]  ;;  %v488_v48 = vld [vmem:[%s2816_s14 + $0x358] sm:$0xff] }
  0xfa   : > { %1886 = vmatprep.subr.bf16.mxu1 %v1885_v43  ;;  %v467_v34 = vld [vmem:[%s2816_s14 + $0x2b0] sm:$0xff]  ;;  %v484_v43 = vld [vmem:[%s2816_s14 + $0x338] sm:$0xff] }
  0xfb   : > { %1824 = vmatpush1.bf16.msra.mxu0 %v1823_v50  ;;  %v1907_v38 = vpack.c.bf16 %v467_v34, %v463_v33  ;;  %v471_v40 = vld [vmem:[%s2816_s14 + $0x2d0] sm:$0xff]  ;;  %v1913_v45 = vpack.c.bf16 %v484_v43, %v480_v42  ;;  %v492_v50 = vld [vmem:[%s2816_s14 + $0x378] sm:$0xff] }
  0xfc   : > { %1826 = vmatprep.subr.bf16.mxu0 %v1825_v52  ;;  %v475_v41 = vld [vmem:[%s2816_s14 + $0x2f0] sm:$0xff]  ;;  %v1917_v52 = vpack.c.bf16 %v492_v50, %v488_v48  ;;  %v496_v55 = vld [vmem:[%s2816_s14 + $0x398] sm:$0xff] }
  0xfd   : > { %1888 = vmatpush1.bf16.msra.mxu1 %v1887_v51  ;;  %v1911_v44 = vpack.c.bf16 %v475_v41, %v471_v40  ;;  %v479_v46 = vld [vmem:[%s2816_s14 + $0x310] sm:$0xff]  ;;  %v504_v61 = vld [vmem:[%s2816_s14 + $0x3d8] sm:$0xff] }
  0xfe   : > { %1890 = vmatprep.subr.bf16.mxu1 %v1889_v56  ;;  %v483_v47 = vld [vmem:[%s2816_s14 + $0x330] sm:$0xff]  ;;  %v500_v56 = vld [vmem:[%s2816_s14 + $0x3b8] sm:$0xff] }
  0xff   : > { %1828 = vmatpush1.bf16.msra.mxu0 %v1827_v62  ;;  %v1915_v51 = vpack.c.bf16 %v483_v47, %v479_v46  ;;  %v487_v53 = vld [vmem:[%s2816_s14 + $0x350] sm:$0xff]  ;;  %v1921_v58 = vpack.c.bf16 %v500_v56, %v496_v55  ;;  %v508_v62 = vld [vmem:[%s2816_s14 + $0x3f8] sm:$0xff] }
 0x100   : > { %1830 = vmatprep.subr.bf16.mxu0 %v1829_v0  ;;  %v491_v54 = vld [vmem:[%s2816_s14 + $0x370] sm:$0xff]  ;;  %v1925_v0 = vpack.c.bf16 %v508_v62, %v504_v61  ;;  %v516_v4 = vld [vmem:[%s2816_s14 + $0x438] sm:$0xff]  ;;  %v996_v62 = vld [vmem:[%s2825_s18 + $0x78] sm:$0xff] }
 0x101   : > { %1892 = vmatpush1.bf16.msra.mxu1 %v1891_v63  ;;  %v1919_v57 = vpack.c.bf16 %v491_v54, %v487_v53  ;;  %v495_v59 = vld [vmem:[%s2816_s14 + $0x390] sm:$0xff]  ;;  %v532_v19 = vld [vmem:[%s2816_s14 + $0x4b8] sm:$0xff] }
 0x102   : > { %1894 = vmatprep.subr.bf16.mxu1 %v1893_v3  ;;  %v499_v60 = vld [vmem:[%s2816_s14 + $0x3b0] sm:$0xff]  ;;  %v512_v3 = vld [vmem:[%s2816_s14 + $0x418] sm:$0xff] }
 0x103   : > { %1832 = vmatpush1.bf16.msra.mxu0 %v1831_v9  ;;  %v1923_v63 = vpack.c.bf16 %v499_v60, %v495_v59  ;;  %v503_v1 = vld [vmem:[%s2816_s14 + $0x3d0] sm:$0xff]  ;;  %v1929_v6 = vpack.c.bf16 %v516_v4, %v512_v3  ;;  %v536_v24 = vld [vmem:[%s2816_s14 + $0x4d8] sm:$0xff]  ;;  %v993_v59 = vld [vmem:[%s2825_s18 + $0x60] sm:$0xff] }
 0x104   : > { %1962 = vmatprep.subr.bf16.mxu0 %v1961_v27  ;;  %v507_v2 = vld [vmem:[%s2816_s14 + $0x3f0] sm:$0xff]  ;;  %v540_v25 = vld [vmem:[%s2816_s14 + $0x4f8] sm:$0xff]  ;;  %v1971_v3 = vpack.c.bf16 %v996_v62, %v993_v59 }
 0x105   : > { %1896 = vmatpush1.bf16.msra.mxu1 %v1895_v10  ;;  %v1927_v5 = vpack.c.bf16 %v507_v2, %v503_v1  ;;  %v511_v7 = vld [vmem:[%s2816_s14 + $0x410] sm:$0xff]  ;;  %v520_v10 = vld [vmem:[%s2816_s14 + $0x458] sm:$0xff]  ;;  %v1941_v26 = vpack.c.bf16 %v540_v25, %v536_v24 }
 0x106   : > { %1898 = vmatprep.subr.bf16.mxu1 %v1897_v11  ;;  %660 = vmatmul.mubr.f32.vlgmr.msra.gmra.mrb[0].mxu0 %v2978_v16  ;;  %v515_v9 = vld [vmem:[%s2816_s14 + $0x430] sm:$0xff]  ;;  %v524_v11 = vld [vmem:[%s2816_s14 + $0x478] sm:$0xff] }
 0x107   : > { %665 = vmatprep.mubr.f32.mxu0 %v2980_v18  ;;  %1964 = vmatpush1.bf16.msra.mxu0 %v1963_v30  ;;  %v1931_v12 = vpack.c.bf16 %v515_v9, %v511_v7  ;;  %v1933_v13 = vpack.c.bf16 %v524_v11, %v520_v10  ;;  %v519_v14 = vld [vmem:[%s2816_s14 + $0x450] sm:$0xff]  ;;  %v544_v28 = vld [vmem:[%s2816_s14 + $0x518] sm:$0xff]  ;;  %v1009_v9 = vld [vmem:[%s2825_s18 + $0xe0] sm:$0xff] }
 0x108   : > { %v523_v15 = vld [vmem:[%s2816_s14 + $0x470] sm:$0xff]  ;;  %v548_v30 = vld [vmem:[%s2816_s14 + $0x538] sm:$0xff] }
 0x109   : > { %1900 = vmatpush1.bf16.msra.mxu1 %v1899_v17  ;;  %v528_v17 = vld [vmem:[%s2816_s14 + $0x498] sm:$0xff]  ;;  %v1935_v20 = vpack.c.bf16 %v523_v15, %v519_v14  ;;  %v527_v22 = vld [vmem:[%s2816_s14 + $0x490] sm:$0xff]  ;;  %v1008_v14 = vld [vmem:[%s2825_s18 + $0xd8] sm:$0xff] }
 0x10a   : > { %1902 = vmatprep.subr.bf16.mxu1 %v1901_v21  ;;  %666 = vmatmul.mubr.f32.gmra.mrb[2].mxu0 %v2992_v29  ;;  %v1937_v21 = vpack.c.bf16 %v532_v19, %v528_v17  ;;  %v531_v23 = vld [vmem:[%s2816_s14 + $0x4b0] sm:$0xff]  ;;  %v552_v34 = vld [vmem:[%s2816_s14 + $0x558] sm:$0xff]  ;;  %v1012_v15 = vld [vmem:[%s2825_s18 + $0xf8] sm:$0xff] }
 0x10b   : > { %v539_v27 = vld [vmem:[%s2816_s14 + $0x4f0] sm:$0xff]  ;;  %v556_v35 = vld [vmem:[%s2816_s14 + $0x578] sm:$0xff] }
 0x10c   : > { %v547_v33 = vld [vmem:[%s2816_s14 + $0x530] sm:$0xff]  ;;  %v560_v41 = vld [vmem:[%s2816_s14 + $0x598] sm:$0xff] }
 0x10d   : > { %1904 = vmatpush1.bf16.msra.mxu1 %v1903_v31  ;;  %v555_v40 = vld [vmem:[%s2816_s14 + $0x570] sm:$0xff]  ;;  %v564_v42 = vld [vmem:[%s2816_s14 + $0x5b8] sm:$0xff] }
 0x10e   : > { %1906 = vmatprep.subr.bf16.mxu1 %v1905_v32  ;;  %v543_v32 = vld [vmem:[%s2816_s14 + $0x510] sm:$0xff]  ;;  %v991_v46 = vld [vmem:[%s2825_s18 + $0x50] sm:$0xff]  ;;  %v1953_v47 = vpack.c.bf16 %v564_v42, %v560_v41  ;;  %v1032_v42 = vld [vmem:[%s2825_s18 + $0x198] sm:$0xff] }
 0x10f   : > { %v1947_v37 = vpack.c.bf16 %v547_v33, %v543_v32  ;;  %v563_v48 = vld [vmem:[%s2816_s14 + $0x5b0] sm:$0xff]  ;;  %v568_v53 = vld [vmem:[%s2816_s14 + $0x5d8] sm:$0xff]  ;;  %v1020_v32 = vld [vmem:[%s2825_s18 + $0x138] sm:$0xff] }
 0x110   : > { %v572_v54 = vld [vmem:[%s2816_s14 + $0x5f8] sm:$0xff]  ;;  %v567_v56 = vld [vmem:[%s2816_s14 + $0x5d0] sm:$0xff]  ;;  %v1024_v33 = vld [vmem:[%s2825_s18 + $0x158] sm:$0xff] }
 0x111   : > { %1908 = vmatpush1.bf16.msra.mxu1 %v1907_v38  ;;  %v1949_v38 = vpack.c.bf16 %v556_v35, %v552_v34  ;;  %v1957_v1 = vpack.c.bf16 %v572_v54, %v568_v53  ;;  %v571_v2 = vld [vmem:[%s2816_s14 + $0x5f0] sm:$0xff]  ;;  %v1015_v17 = vld [vmem:[%s2825_s18 + $0x110] sm:$0xff]  ;;  %v989_v53 = vld [vmem:[%s2825_s18 + $0x40] sm:$0xff] }
 0x112   : > { %1910 = vmatprep.subr.bf16.mxu1 %v1909_v39  ;;  %v551_v39 = vld [vmem:[%s2816_s14 + $0x550] sm:$0xff]  ;;  %v1959_v10 = vpack.c.bf16 %v571_v2, %v567_v56  ;;  %v1027_v34 = vld [vmem:[%s2825_s18 + $0x170] sm:$0xff]  ;;  %v992_v54 = vld [vmem:[%s2825_s18 + $0x58] sm:$0xff] }
 0x113   : > { %v1951_v43 = vpack.c.bf16 %v555_v40, %v551_v39  ;;  %v1006_v7 = vld [vmem:[%s2825_s18 + $0xc8] sm:$0xff]  ;;  %v1023_v35 = vld [vmem:[%s2825_s18 + $0x150] sm:$0xff]  ;;  %v1033_v39 = vld [vmem:[%s2825_s18 + $0x1a0] sm:$0xff]  ;;  %v2095_v56 = vpack.c.bf16 %v992_v54, %v989_v53 }
 0x114   : > { %v1014_v24 = vld [vmem:[%s2825_s18 + $0x108] sm:$0xff]  ;;  %v1043_v62 = vld [vmem:[%s2825_s18 + $0x1f0] sm:$0xff] }
 0x115   : > { %1912 = vmatpush1.bf16.msra.mxu1 %v1911_v44  ;;  %v559_v44 = vld [vmem:[%s2816_s14 + $0x590] sm:$0xff]  ;;  %v1075_v53 = vld [vmem:[%s2825_s18 + $0x2f0] sm:$0xff] }
 0x116   : > { %1914 = vmatprep.subr.bf16.mxu1 %v1913_v45  ;;  %v988_v45 = vld [vmem:[%s2825_s18 + $0x38] sm:$0xff]  ;;  %v1955_v60 = vpack.c.bf16 %v563_v48, %v559_v44  ;;  %v1038_v48 = vld [vmem:[%s2825_s18 + $0x1c8] sm:$0xff] }
 0x117   : > { %v1965_v50 = vpack.c.bf16 %v991_v46, %v988_v45  ;;  %v1036_v44 = vld [vmem:[%s2825_s18 + $0x1b8] sm:$0xff]  ;;  %v1039_v45 = vld [vmem:[%s2825_s18 + $0x1d0] sm:$0xff]  ;;  %v998_v2 = vld [vmem:[%s2825_s18 + $0x88] sm:$0xff] }
 0x118   : > { %v1997_v46 = vpack.c.bf16 %v1039_v45, %v1036_v44  ;;  %v1067_v45 = vld [vmem:[%s2825_s18 + $0x2b0] sm:$0xff] }
 0x119   : > { %1916 = vmatpush1.bf16.msra.mxu1 %v1915_v51  ;;  %v987_v51 = vld [vmem:[%s2825_s18 + $0x30] sm:$0xff]  ;;  %1966 = vmatprep.subr.bf16.mxu0 %v1965_v50  ;;  %v1037_v50 = vld [vmem:[%s2825_s18 + $0x1c0] sm:$0xff] }
 0x11a   : > { %1918 = vmatprep.subr.bf16.mxu1 %v1917_v52  ;;  %v990_v52 = vld [vmem:[%s2825_s18 + $0x48] sm:$0xff] }
 0x11b   : > { %v1967_v55 = vpack.c.bf16 %v990_v52, %v987_v51  ;;  %v1040_v52 = vld [vmem:[%s2825_s18 + $0x1d8] sm:$0xff] }
 0x11d   : > { %1920 = vmatpush1.bf16.msra.mxu1 %v1919_v57  ;;  %v994_v57 = vld [vmem:[%s2825_s18 + $0x68] sm:$0xff]  ;;  %1968 = vmatpush1.bf16.msra.mxu0 %v1967_v55  ;;  %v2093_v55 = vpack.c.bf16 %v1040_v52, %v1037_v50  ;;  %v1072_v52 = vld [vmem:[%s2825_s18 + $0x2d8] sm:$0xff] }
 0x11e   : > { %1922 = vmatprep.subr.bf16.mxu1 %v1921_v58  ;;  %v997_v58 = vld [vmem:[%s2825_s18 + $0x80] sm:$0xff]  ;;  %v2021_v54 = vpack.c.bf16 %v1075_v53, %v1072_v52  ;;  %v1080_v52 = vld [vmem:[%s2825_s18 + $0x318] sm:$0xff] }
 0x11f   : > { %v1969_v61 = vpack.c.bf16 %v997_v58, %v994_v57  ;;  %v1042_v57 = vld [vmem:[%s2825_s18 + $0x1e8] sm:$0xff]  ;;  %v1045_v58 = vld [vmem:[%s2825_s18 + $0x200] sm:$0xff] }
 0x120   : > { %v2001_v59 = vpack.c.bf16 %v1045_v58, %v1042_v57  ;;  %v1073_v57 = vld [vmem:[%s2825_s18 + $0x2e0] sm:$0xff] }
 0x121   : > { %1924 = vmatpush1.bf16.msra.mxu1 %v1923_v63  ;;  %v1000_v63 = vld [vmem:[%s2825_s18 + $0x98] sm:$0xff]  ;;  %1970 = vmatprep.subr.bf16.mxu0 %v1969_v61 }
 0x122   : > { %1926 = vmatprep.subr.bf16.mxu1 %v1925_v0  ;;  %v1003_v0 = vld [vmem:[%s2825_s18 + $0xb0] sm:$0xff]  ;;  %1972 = vmatpush1.bf16.msra.mxu0 %v1971_v3  ;;  %v1044_v61 = vld [vmem:[%s2825_s18 + $0x1f8] sm:$0xff] }
 0x123   : > { %v1973_v4 = vpack.c.bf16 %v1003_v0, %v1000_v63  ;;  %v1046_v0 = vld [vmem:[%s2825_s18 + $0x208] sm:$0xff] }
 0x124   : > { %v2097_v3 = vpack.c.bf16 %v1046_v0, %v1043_v62  ;;  %v1028_v62 = vld [vmem:[%s2825_s18 + $0x178] sm:$0xff] }
 0x125   : > { %1928 = vmatpush1.bf16.msra.mxu1 %v1927_v5  ;;  %v999_v5 = vld [vmem:[%s2825_s18 + $0x90] sm:$0xff]  ;;  %1974 = vmatprep.subr.bf16.mxu0 %v1973_v4 }
 0x126   : > { %1930 = vmatprep.subr.bf16.mxu1 %v1929_v6  ;;  %v1002_v6 = vld [vmem:[%s2825_s18 + $0xa8] sm:$0xff] }
 0x127   : > { %v1975_v11 = vpack.c.bf16 %v1002_v6, %v999_v5  ;;  %v1048_v5 = vld [vmem:[%s2825_s18 + $0x218] sm:$0xff]  ;;  %v1051_v6 = vld [vmem:[%s2825_s18 + $0x230] sm:$0xff] }
 0x128   : > { %814 = vmatmul.mubr.f32.vlgmr.msra.gmra.mrb[4].mxu1 %v2978_v16  ;;  %v1939_v16 = vpack.c.bf16 %v531_v23, %v527_v22  ;;  %v1034_v22 = vld [vmem:[%s2825_s18 + $0x1a8] sm:$0xff]  ;;  %v1981_v23 = vpack.c.bf16 %v1015_v17, %v1012_v15  ;;  %v1004_v15 = vld [vmem:[%s2825_s18 + $0xb8] sm:$0xff] }
 0x129   : > { %1932 = vmatpush1.bf16.msra.mxu1 %v1931_v12  ;;  %819 = vmatprep.mubr.f32.mxu1 %v2980_v18  ;;  %v535_v18 = vld [vmem:[%s2816_s14 + $0x4d0] sm:$0xff]  ;;  %v1977_v12 = vpack.c.bf16 %v1009_v9, %v1006_v7  ;;  %v2005_v7 = vpack.c.bf16 %v1051_v6, %v1048_v5  ;;  %v1047_v9 = vld [vmem:[%s2825_s18 + $0x210] sm:$0xff] }
 0x12a   : > { %1934 = vmatprep.subr.bf16.mxu1 %v1933_v13  ;;  %v1943_v31 = vpack.c.bf16 %v539_v27, %v535_v18  ;;  %v1005_v13 = vld [vmem:[%s2825_s18 + $0xc0] sm:$0xff]  ;;  %1976 = vmatpush1.bf16.msra.mxu0 %v1975_v11  ;;  %v1018_v18 = vld [vmem:[%s2825_s18 + $0x128] sm:$0xff] }
 0x12b   : > { %v1979_v19 = vpack.c.bf16 %v1008_v14, %v1005_v13  ;;  %1978 = vmatprep.subr.bf16.mxu0 %v1977_v12  ;;  %v1021_v27 = vld [vmem:[%s2825_s18 + $0x140] sm:$0xff]  ;;  %v1052_v13 = vld [vmem:[%s2825_s18 + $0x238] sm:$0xff]  ;;  %v1130_v5 = vld [vmem:[%s2825_s18 + $0x4a8] sm:$0xff] }
 0x12c   : > { %820 = vmatmul.mubr.f32.gmra.mrb[6].mxu1 %v2992_v29  ;;  %v1945_v29 = vpack.c.bf16 %v548_v30, %v544_v28  ;;  %v1049_v11 = vld [vmem:[%s2825_s18 + $0x220] sm:$0xff] }
 0x12d   : > { %1936 = vmatpush1.bf16.msra.mxu1 %v1935_v20  ;;  %890 = vmatprep.mubr.f32.mxu1 %v2546_v8  ;;  %v1011_v20 = vld [vmem:[%s2825_s18 + $0xf0] sm:$0xff]  ;;  %v1001_v14 = vld [vmem:[%s2825_s18 + $0xa0] sm:$0xff]  ;;  %v2101_v17 = vpack.c.bf16 %v1052_v13, %v1049_v11 }
 0x12e   : > { %1938 = vmatprep.subr.bf16.mxu1 %v1937_v21  ;;  %v1031_v21 = vld [vmem:[%s2825_s18 + $0x190] sm:$0xff]  ;;  %1980 = vmatpush1.bf16.msra.mxu0 %v1979_v19  ;;  %v1983_v30 = vpack.c.bf16 %v1014_v24, %v1011_v20  ;;  %v2103_v19 = vpack.c.bf16 %v1004_v15, %v1001_v14  ;;  %v1054_v20 = vld [vmem:[%s2825_s18 + $0x248] sm:$0xff]  ;;  %v1056_v24 = vld [vmem:[%s2825_s18 + $0x258] sm:$0xff] }
 0x12f   : > { %v2089_v25 = vpack.c.bf16 %v1034_v22, %v1031_v21  ;;  %1982 = vmatprep.subr.bf16.mxu0 %v1981_v23  ;;  %v1057_v21 = vld [vmem:[%s2825_s18 + $0x260] sm:$0xff]  ;;  %v3157_v15 = vld [vmem:[%s315_s1] sm:$0xf] }
 0x130   : > { %v2009_v22 = vpack.c.bf16 %v1057_v21, %v1054_v20  ;;  %v1053_v23 = vld [vmem:[%s2825_s18 + $0x240] sm:$0xff] }
 0x131   : > { %1940 = vmatpush1.bf16.msra.mxu1 %v1939_v16  ;;  %v983_v16 = vld [vmem:[%s2825_s18 + $0x10] sm:$0xff] }
 0x132   : > { %1942 = vmatprep.subr.bf16.mxu1 %v1941_v26  ;;  %v986_v26 = vld [vmem:[%s2825_s18 + $0x28] sm:$0xff]  ;;  %1984 = vmatpush1.bf16.msra.mxu0 %v1983_v30 }
 0x133   : > { %v2091_v28 = vpack.c.bf16 %v986_v26, %v983_v16  ;;  %v2011_v16 = vpack.c.bf16 %v1056_v24, %v1053_v23  ;;  %v1058_v26 = vld [vmem:[%s2825_s18 + $0x268] sm:$0xff] }
 0x135   : > { %1944 = vmatpush1.bf16.msra.mxu1 %v1943_v31  ;;  %v1985_v31 = vpack.c.bf16 %v1021_v27, %v1018_v18  ;;  %v1007_v18 = vld [vmem:[%s2825_s18 + $0xd0] sm:$0xff]  ;;  %v1010_v27 = vld [vmem:[%s2825_s18 + $0xe8] sm:$0xff] }
 0x136   : > { %1946 = vmatprep.subr.bf16.mxu1 %v1945_v29  ;;  %v1017_v29 = vld [vmem:[%s2825_s18 + $0x120] sm:$0xff]  ;;  %v2107_v30 = vpack.c.bf16 %v1010_v27, %v1007_v18 }
 0x137   : > { %1986 = vmatprep.subr.bf16.mxu0 %v1985_v31  ;;  %v1060_v31 = vld [vmem:[%s2825_s18 + $0x278] sm:$0xff] }
 0x139   : > { %1948 = vmatpush1.bf16.msra.mxu1 %v1947_v37  ;;  %v1026_v37 = vld [vmem:[%s2825_s18 + $0x168] sm:$0xff] }
 0x13a   : > { %1950 = vmatprep.subr.bf16.mxu1 %v1949_v38  ;;  %v1030_v38 = vld [vmem:[%s2825_s18 + $0x188] sm:$0xff]  ;;  %v1991_v40 = vpack.c.bf16 %v1026_v37, %v1023_v35 }
 0x13b   : > { %v1993_v41 = vpack.c.bf16 %v1033_v39, %v1030_v38  ;;  %v1013_v38 = vld [vmem:[%s2825_s18 + $0x100] sm:$0xff]  ;;  %v1016_v39 = vld [vmem:[%s2825_s18 + $0x118] sm:$0xff] }
 0x13d   : > { %1952 = vmatpush1.bf16.msra.mxu1 %v1951_v43 }
 0x13e   : > { %1954 = vmatprep.subr.bf16.mxu1 %v1953_v47  ;;  %v1035_v47 = vld [vmem:[%s2825_s18 + $0x1b0] sm:$0xff] }
 0x13f   : > { %v1999_v51 = vpack.c.bf16 %v1038_v48, %v1035_v47  ;;  %v1019_v47 = vld [vmem:[%s2825_s18 + $0x130] sm:$0xff] }
 0x141   : > { %1956 = vmatpush1.bf16.msra.mxu1 %v1955_v60  ;;  %v1041_v60 = vld [vmem:[%s2825_s18 + $0x1e0] sm:$0xff] }
 0x142   : > { %1958 = vmatprep.subr.bf16.mxu1 %v1957_v1  ;;  %v2003_v63 = vpack.c.bf16 %v1044_v61, %v1041_v60  ;;  %v995_v1 = vld [vmem:[%s2825_s18 + $0x70] sm:$0xff]  ;;  %v1025_v61 = vld [vmem:[%s2825_s18 + $0x160] sm:$0xff] }
 0x143   : > { %v2099_v4 = vpack.c.bf16 %v998_v2, %v995_v1  ;;  %v2119_v0 = vpack.c.bf16 %v1028_v62, %v1025_v61  ;;  %v1078_v1 = vld [vmem:[%s2825_s18 + $0x308] sm:$0xff]  ;;  %v1081_v2 = vld [vmem:[%s2825_s18 + $0x320] sm:$0xff]  ;;  %v1136_v62 = vld [vmem:[%s2825_s18 + $0x4d8] sm:$0xff] }
 0x144   : > { %v1133_v61 = vld [vmem:[%s2825_s18 + $0x4c0] sm:$0xff] }
 0x145   : > { %1960 = vmatpush1.bf16.msra.mxu1 %v1959_v10  ;;  %v1050_v10 = vld [vmem:[%s2825_s18 + $0x228] sm:$0xff] }
 0x146   : > { %2090 = vmatprep.subr.bf16.mxu1 %v2089_v25  ;;  %v2007_v12 = vpack.c.bf16 %v1050_v10, %v1047_v9  ;;  %v1055_v25 = vld [vmem:[%s2825_s18 + $0x250] sm:$0xff] }
 0x148   : > { %891 = vmatmul.mubr.f32.vlgmr.msra.gmra.mrb[4].mxu1 %v2913_v49  ;;  %v1987_v49 = vpack.c.bf16 %v1020_v32, %v1017_v29  ;;  %v1063_v29 = vld [vmem:[%s2825_s18 + $0x290] sm:$0xff] }
 0x149   : > { %896 = vmatprep.mubr.f32.mxu1 %v2546_v8  ;;  %2092 = vmatpush3.bf16.msra.mxu1 %v2091_v28  ;;  %v1989_v8 = vpack.c.bf16 %v1027_v34, %v1024_v33  ;;  %v2105_v28 = vpack.c.bf16 %v1058_v26, %v1055_v25  ;;  %v1059_v32 = vld [vmem:[%s2825_s18 + $0x270] sm:$0xff]  ;;  %v2013_v33 = vpack.c.bf16 %v1063_v29, %v1060_v31  ;;  %v1062_v34 = vld [vmem:[%s2825_s18 + $0x288] sm:$0xff] }
 0x14a   : > { %1988 = vmatpush1.bf16.msra.mxu0 %v1987_v49  ;;  %2094 = vmatprep.subr.bf16.mxu1 %v2093_v55  ;;  %v1061_v49 = vld [vmem:[%s2825_s18 + $0x280] sm:$0xff]  ;;  %v2015_v35 = vpack.c.bf16 %v1062_v34, %v1059_v32  ;;  %v1071_v55 = vld [vmem:[%s2825_s18 + $0x2d0] sm:$0xff] }
 0x14b   : > { %1990 = vmatprep.subr.bf16.mxu0 %v1989_v8  ;;  %v1064_v8 = vld [vmem:[%s2825_s18 + $0x298] sm:$0xff] }
 0x14c   : > { %897 = vmatmul.mubr.f32.gmra.mrb[6].mxu1 %v2949_v36  ;;  %v1029_v36 = vld [vmem:[%s2825_s18 + $0x180] sm:$0xff]  ;;  %v2109_v37 = vpack.c.bf16 %v1064_v8, %v1061_v49 }
 0x14d   : > { %v1995_v43 = vpack.c.bf16 %v1032_v42, %v1029_v36  ;;  %2096 = vmatpush3.bf16.msra.mxu1 %v2095_v56  ;;  %v1069_v36 = vld [vmem:[%s2825_s18 + $0x2c0] sm:$0xff]  ;;  %v1074_v56 = vld [vmem:[%s2825_s18 + $0x2e8] sm:$0xff] }
 0x14e   : > { %1992 = vmatpush1.bf16.msra.mxu0 %v1991_v40  ;;  %2098 = vmatprep.subr.bf16.mxu1 %v2097_v3  ;;  %v1066_v40 = vld [vmem:[%s2825_s18 + $0x2a8] sm:$0xff]  ;;  %v1065_v42 = vld [vmem:[%s2825_s18 + $0x2a0] sm:$0xff]  ;;  %v2025_v3 = vpack.c.bf16 %v1081_v2, %v1078_v1 }
 0x14f   : > { %1994 = vmatprep.subr.bf16.mxu0 %v1993_v41  ;;  %v2111_v41 = vpack.c.bf16 %v1016_v39, %v1013_v38  ;;  %v2017_v44 = vpack.c.bf16 %v1069_v36, %v1066_v40 }
 0x151   : > { %2100 = vmatpush3.bf16.msra.mxu1 %v2099_v4  ;;  %v1127_v4 = vld [vmem:[%s2825_s18 + $0x490] sm:$0xff] }
 0x152   : > { %1996 = vmatpush1.bf16.msra.mxu0 %v1995_v43  ;;  %2102 = vmatprep.subr.bf16.mxu1 %v2101_v17  ;;  %v1068_v43 = vld [vmem:[%s2825_s18 + $0x2b8] sm:$0xff]  ;;  %v2121_v6 = vpack.c.bf16 %v1130_v5, %v1127_v4  ;;  %v1083_v4 = vld [vmem:[%s2825_s18 + $0x330] sm:$0xff]  ;;  %v1086_v5 = vld [vmem:[%s2825_s18 + $0x348] sm:$0xff] }
 0x153   : > { %1998 = vmatprep.subr.bf16.mxu0 %v1997_v46  ;;  %v1070_v46 = vld [vmem:[%s2825_s18 + $0x2c8] sm:$0xff]  ;;  %v2019_v48 = vpack.c.bf16 %v1068_v43, %v1065_v42 }
 0x154   : > { %v2113_v50 = vpack.c.bf16 %v1070_v46, %v1067_v45 }
 0x155   : > { %2104 = vmatpush3.bf16.msra.mxu1 %v2103_v19 }
 0x156   : > { %2000 = vmatpush1.bf16.msra.mxu0 %v1999_v51  ;;  %2106 = vmatprep.subr.bf16.mxu1 %v2105_v28  ;;  %v1022_v51 = vld [vmem:[%s2825_s18 + $0x148] sm:$0xff] }
 0x157   : > { %2002 = vmatprep.subr.bf16.mxu0 %v2001_v59  ;;  %v2115_v58 = vpack.c.bf16 %v1022_v51, %v1019_v47  ;;  %v1076_v59 = vld [vmem:[%s2825_s18 + $0x2f8] sm:$0xff]  ;;  %v1077_v51 = vld [vmem:[%s2825_s18 + $0x300] sm:$0xff] }
 0x158   : > { %v2117_v60 = vpack.c.bf16 %v1076_v59, %v1073_v57  ;;  %v1082_v57 = vld [vmem:[%s2825_s18 + $0x328] sm:$0xff] }
 0x159   : > { %2108 = vmatpush3.bf16.msra.mxu1 %v2107_v30 }
 0x15a   : > { %2004 = vmatpush1.bf16.msra.mxu0 %v2003_v63  ;;  %2110 = vmatprep.subr.bf16.mxu1 %v2109_v37  ;;  %v2023_v63 = vpack.c.bf16 %v1074_v56, %v1071_v55  ;;  %v1084_v55 = vld [vmem:[%s2825_s18 + $0x338] sm:$0xff]  ;;  %v1079_v56 = vld [vmem:[%s2825_s18 + $0x310] sm:$0xff] }
 0x15b   : > { %2006 = vmatprep.subr.bf16.mxu0 %v2005_v7 }
 0x15d   : > { %2112 = vmatpush3.bf16.msra.mxu1 %v2111_v41 }
 0x15e   : > { %2008 = vmatpush1.bf16.msra.mxu0 %v2007_v12  ;;  %2114 = vmatprep.subr.bf16.mxu1 %v2113_v50  ;;  %v575_v12 = vlaneseq }
 0x15f   : > { %2010 = vmatprep.subr.bf16.mxu0 %v2009_v22 }
 0x160   : > { %v3152_v13 = vshrl.u32 %v575_v12, 7 }
 0x161   : > { %2116 = vmatpush3.bf16.msra.mxu1 %v2115_v58 }
 0x162   : > { %2012 = vmatpush1.bf16.msra.mxu0 %v2011_v16  ;;  %2118 = vmatprep.subr.bf16.mxu1 %v2117_v60  ;;  %v577_v14 = vsub.s32 0, %v3152_v13  ;;  %v581_v17 = vsub.s32 1, %v3152_v13  ;;  %v1087_v60 = vld [vmem:[%s2825_s18 + $0x350] sm:$0xff] }
 0x163   : > { %2014 = vmatprep.subr.bf16.mxu0 %v2013_v33 }
 0x164   : > { %v578_v19 = vrot.slane %v3157_v15, %v577_v14  ;;  %v582_v20 = vrot.slane %v3157_v15, %v581_v17 }
 0x165   : > { %2120 = vmatpush3.bf16.msra.mxu1 %v2119_v0 }
 0x166   : > { %2016 = vmatpush1.bf16.msra.mxu0 %v2015_v35  ;;  %2122 = vmatprep.subr.bf16.mxu1 %v2121_v6 }
 0x167   : > { %2018 = vmatprep.subr.bf16.mxu0 %v2017_v44 }
 0x16a   : > { %2020 = vmatpush1.bf16.msra.mxu0 %v2019_v48 }
 0x16b   : > { %2022 = vmatprep.subr.bf16.mxu0 %v2021_v54 }
 0x16e   : > { %2024 = vmatpush1.bf16.msra.mxu0 %v2023_v63 }
 0x16f   : > { %2026 = vmatprep.subr.bf16.mxu0 %v2025_v3  ;;  %v2027_v3 = vpack.c.bf16 %v1080_v52, %v1077_v51  ;;  %v1101_v51 = vld [vmem:[%s2825_s18 + $0x3c0] sm:$0xff]  ;;  %v1104_v52 = vld [vmem:[%s2825_s18 + $0x3d8] sm:$0xff] }
 0x1bb   : > { %v738_v7 = vpop.f32.mrb[0].mxu1 }
 0x1bc   : > { %v740_v9 = vpop.f32.mrb[1].mxu1 }
 0x1bf   : > { %v744_v10 = vpop.f32.mrb[2].mxu1 }
 0x1c0   : > { %v746_v11 = vpop.f32.mrb[3].mxu1 }
 0x1d9   : > { %v661_v21 = vpop.f32.mrb[0].mxu0 }
 0x1da   : > { %v662_v22 = vadd.f32 %v661_v21, %v578_v19  ;;  %v663_v23 = vpop.f32.mrb[1].mxu0  ;;  %v1085_v21 = vld [vmem:[%s2825_s18 + $0x340] sm:$0xff] }
 0x1db   : > { %v664_v24 = vadd.f32 %v663_v23, %v582_v20 }
 0x1dc   : > { %v739_v25 = vadd.f32 %v738_v7, %v662_v22  ;;  %v2123_v7 = vpack.c.bf16 %v1082_v57, %v1079_v56  ;;  %v1088_v22 = vld [vmem:[%s2825_s18 + $0x358] sm:$0xff]  ;;  %v1103_v57 = vld [vmem:[%s2825_s18 + $0x3d0] sm:$0xff] }
 0x1dd   : > { %v741_v16 = vadd.f32 %v740_v9, %v664_v24  ;;  %v667_v26 = vpop.f32.mrb[2].mxu0  ;;  %v1093_v24 = vld [vmem:[%s2825_s18 + $0x380] sm:$0xff] }
 0x1de   : > { %v919_v18 = vmul.f32 0.044715, %v739_v25  ;;  %v668_v27 = vadd.f32 %v667_v26, %v578_v19  ;;  %v669_v28 = vpop.f32.mrb[3].mxu0  ;;  %v911_v49 = vmul.f32 0.7978846, %v739_v25  ;;  %v903_v63 = vmul.f32 0.5, %v739_v25 }
 0x1df   : > { %v920_v30 = vmul.f32 0.044715, %v741_v16  ;;  %v670_v31 = vadd.f32 %v669_v28, %v582_v20  ;;  %v912_v37 = vmul.f32 0.7978846, %v741_v16  ;;  %v904_v58 = vmul.f32 0.5, %v741_v16  ;;  %v1090_v19 = vld [vmem:[%s2825_s18 + $0x368] sm:$0xff] }
 0x1e0   : > { %v927_v29 = vmul.f32 %v919_v18, %v739_v25  ;;  %v745_v32 = vadd.f32 %v744_v10, %v668_v27  ;;  %v2125_v20 = vpack.c.bf16 %v1136_v62, %v1133_v61  ;;  %v1139_v25 = vld [vmem:[%s2825_s18 + $0x4f0] sm:$0xff]  ;;  %v2031_v18 = vpack.c.bf16 %v1086_v5, %v1083_v4  ;;  %v1089_v28 = vld [vmem:[%s2825_s18 + $0x360] sm:$0xff]  ;;  %v1160_v61 = vld [vmem:[%s2825_s18 + $0x598] sm:$0xff] }
 0x1e1   : > { %v928_v33 = vmul.f32 %v920_v30, %v741_v16  ;;  %v747_v34 = vadd.f32 %v746_v11, %v670_v31  ;;  %v2029_v11 = vpack.c.bf16 %v1087_v60, %v1084_v55  ;;  %v1142_v16 = vld [vmem:[%s2825_s18 + $0x508] sm:$0xff]  ;;  %v1092_v30 = vld [vmem:[%s2825_s18 + $0x378] sm:$0xff]  ;;  %v2127_v31 = vpack.c.bf16 %v1088_v22, %v1085_v21  ;;  %v1157_v60 = vld [vmem:[%s2825_s18 + $0x580] sm:$0xff] }
 0x1e2   : > { %v935_v8 = vadd.f32 1.0, %v927_v29  ;;  %v923_v35 = vmul.f32 0.044715, %v745_v32  ;;  %v915_v41 = vmul.f32 0.7978846, %v745_v32  ;;  %v907_v0 = vmul.f32 0.5, %v745_v32 }
 0x1e3   : > { %v936_v38 = vadd.f32 1.0, %v928_v33  ;;  %v924_v39 = vmul.f32 0.044715, %v747_v34  ;;  %v916_v42 = vmul.f32 0.7978846, %v747_v34  ;;  %v908_v6 = vmul.f32 0.5, %v747_v34 }
 0x1e4   : > { %v943_v40 = vmul.f32 %v935_v8, %v911_v49  ;;  %v931_v36 = vmul.f32 %v923_v35, %v745_v32  ;;  %v2033_v29 = vpack.c.bf16 %v1093_v24, %v1090_v19  ;;  %v1096_v32 = vld [vmem:[%s2825_s18 + $0x398] sm:$0xff]  ;;  %v2129_v33 = vpack.c.bf16 %v1142_v16, %v1139_v25  ;;  %v1094_v49 = vld [vmem:[%s2825_s18 + $0x388] sm:$0xff]  ;;  %v1099_v8 = vld [vmem:[%s2825_s18 + $0x3b0] sm:$0xff] }
 0x1e5   : > { %v932_v43 = vmul.f32 %v924_v39, %v747_v34  ;;  %v944_v44 = vmul.f32 %v936_v38, %v912_v37  ;;  %v1091_v34 = vld [vmem:[%s2825_s18 + $0x370] sm:$0xff]  ;;  %v1145_v35 = vld [vmem:[%s2825_s18 + $0x520] sm:$0xff]  ;;  %v1148_v37 = vld [vmem:[%s2825_s18 + $0x538] sm:$0xff]  ;;  %v2035_v38 = vpack.c.bf16 %v1092_v30, %v1089_v28  ;;  %v2043_v62 = vpack.c.bf16 %v1104_v52, %v1101_v51 }
 0x1e6   : > { %2279 = vtanh.f32 %v943_v40  ;;  %v939_v45 = vadd.f32 1.0, %v931_v36  ;;  %v1095_v39 = vld [vmem:[%s2825_s18 + $0x390] sm:$0xff]  ;;  %v1098_v40 = vld [vmem:[%s2825_s18 + $0x3a8] sm:$0xff]  ;;  %v2037_v36 = vpack.c.bf16 %v1099_v8, %v1096_v32  ;;  %v1108_v55 = vld [vmem:[%s2825_s18 + $0x3f8] sm:$0xff]  ;;  %v2141_v4 = vpack.c.bf16 %v1160_v61, %v1157_v60 }
 0x1e7   : > { %v940_v46 = vadd.f32 1.0, %v932_v43  ;;  %2281 = vtanh.f32 %v944_v44  ;;  %v2133_v43 = vpack.c.bf16 %v1148_v37, %v1145_v35  ;;  %v1097_v44 = vld [vmem:[%s2825_s18 + $0x3a0] sm:$0xff]  ;;  %v1116_v19 = vld [vmem:[%s2825_s18 + $0x438] sm:$0xff]  ;;  %v1115_v24 = vld [vmem:[%s2825_s18 + $0x430] sm:$0xff] }
 0x1e8   : > { %v947_v47 = vmul.f32 %v939_v45, %v915_v41  ;;  %v2131_v41 = vpack.c.bf16 %v1094_v49, %v1091_v34  ;;  %v1100_v45 = vld [vmem:[%s2825_s18 + $0x3b8] sm:$0xff]  ;;  %v1109_v5 = vld [vmem:[%s2825_s18 + $0x400] sm:$0xff]  ;;  %v1118_v25 = vld [vmem:[%s2825_s18 + $0x448] sm:$0xff] }
 0x1e9   : > { %v948_v48 = vmul.f32 %v940_v46, %v916_v42  ;;  %v1102_v42 = vld [vmem:[%s2825_s18 + $0x3c8] sm:$0xff]  ;;  %v1105_v46 = vld [vmem:[%s2825_s18 + $0x3e0] sm:$0xff]  ;;  %v1120_v22 = vld [vmem:[%s2825_s18 + $0x458] sm:$0xff]  ;;  %v2147_v30 = vpack.c.bf16 %v1118_v25, %v1115_v24 }
 0x1ea   : > { %2283 = vtanh.f32 %v947_v47  ;;  %v1151_v47 = vld [vmem:[%s2825_s18 + $0x550] sm:$0xff]  ;;  %v1124_v34 = vld [vmem:[%s2825_s18 + $0x478] sm:$0xff]  ;;  %v1126_v49 = vld [vmem:[%s2825_s18 + $0x488] sm:$0xff] }
 0x1eb   : > { %2285 = vtanh.f32 %v948_v48  ;;  %v1154_v48 = vld [vmem:[%s2825_s18 + $0x568] sm:$0xff]  ;;  %v1123_v16 = vld [vmem:[%s2825_s18 + $0x470] sm:$0xff]  ;;  %v1129_v8 = vld [vmem:[%s2825_s18 + $0x4a0] sm:$0xff] }
 0x1ec   : > { %v2137_v56 = vpack.c.bf16 %v1154_v48, %v1151_v47  ;;  %v1119_v28 = vld [vmem:[%s2825_s18 + $0x450] sm:$0xff]  ;;  %v1134_v47 = vld [vmem:[%s2825_s18 + $0x4c8] sm:$0xff] }
 0x1ed   : > { %v1138_v48 = vld [vmem:[%s2825_s18 + $0x4e8] sm:$0xff] }
 0x1f0   : > { %v2280_v50 = vpop.eup %2279 }
 0x1f1   : > { %v2282_v53 = vpop.eup %2281  ;;  %v959_v54 = vadd.f32 1.0, %v2280_v50  ;;  %v2039_v50 = vpack.c.bf16 %v1098_v40, %v1095_v39  ;;  %v1125_v39 = vld [vmem:[%s2825_s18 + $0x480] sm:$0xff]  ;;  %v1128_v40 = vld [vmem:[%s2825_s18 + $0x498] sm:$0xff] }
 0x1f2   : > { %v960_v59 = vadd.f32 1.0, %v2282_v53  ;;  %v2135_v53 = vpack.c.bf16 %v1100_v45, %v1097_v44  ;;  %v589_v44 = vsub.s32 3, %v3152_v13 }
 0x1f3   : > { %v967_v10 = vmul.f32 %v959_v54, %v903_v63  ;;  %v2041_v54 = vpack.c.bf16 %v1105_v46, %v1102_v42  ;;  %v1107_v63 = vld [vmem:[%s2825_s18 + $0x3f0] sm:$0xff]  ;;  %v585_v42 = vsub.s32 2, %v3152_v13 }
 0x1f4   : > { %v2284_v1 = vpop.eup %2283  ;;  %v968_v2 = vmul.f32 %v960_v59, %v904_v58  ;;  %v1106_v58 = vld [vmem:[%s2825_s18 + $0x3e8] sm:$0xff]  ;;  %v1111_v59 = vld [vmem:[%s2825_s18 + $0x410] sm:$0xff]  ;;  %v590_v52 = vrot.slane %v3157_v15, %v589_v44 }
 0x1f5   : > { %v2286_v9 = vpop.eup %2285  ;;  %v963_v12 = vadd.f32 1.0, %v2284_v1  ;;  %v2139_v1 = vpack.c.bf16 %v1106_v58, %v1103_v57  ;;  %v1131_v46 = vld [vmem:[%s2825_s18 + $0x4b0] sm:$0xff]  ;;  %v586_v51 = vrot.slane %v3157_v15, %v585_v42  ;;  %v1144_v58 = vld [vmem:[%s2825_s18 + $0x518] sm:$0xff] }
 0x1f6   : > { %1237 = vmatprep.mubr.f32.mxu0 %v968_v2  ;;  %1391 = vmatprep.mubr.f32.mxu1 %v968_v2  ;;  %v964_v23 = vadd.f32 1.0, %v2286_v9  ;;  %v2045_v2 = vpack.c.bf16 %v1111_v59, %v1108_v55  ;;  %v1163_v9 = vld [vmem:[%s2825_s18 + $0x5b0] sm:$0xff]  ;;  %v1137_v55 = vld [vmem:[%s2825_s18 + $0x4e0] sm:$0xff] }
 0x1f7   : > { %1238 = vmatmul.mubr.f32.vlgmr.msra.gmra.mrb[4].mxu0 %v967_v10  ;;  %1392 = vmatmul.mubr.f32.vlgmr.msra.gmra.mrb[8].mxu1 %v967_v10  ;;  %v971_v26 = vmul.f32 %v963_v12, %v907_v0  ;;  %v1110_v0 = vld [vmem:[%s2825_s18 + $0x408] sm:$0xff]  ;;  %v1113_v12 = vld [vmem:[%s2825_s18 + $0x420] sm:$0xff]  ;;  %v1147_v59 = vld [vmem:[%s2825_s18 + $0x530] sm:$0xff] }
 0x1f8   : > { %2028 = vmatpush1.bf16.msra.mxu0 %v2027_v3  ;;  %v972_v27 = vmul.f32 %v964_v23, %v908_v6  ;;  %2124 = vmatpush3.bf16.msra.mxu1 %v2123_v7  ;;  %v1114_v3 = vld [vmem:[%s2825_s18 + $0x428] sm:$0xff]  ;;  %v1112_v6 = vld [vmem:[%s2825_s18 + $0x418] sm:$0xff]  ;;  %v1117_v7 = vld [vmem:[%s2825_s18 + $0x440] sm:$0xff] }
 0x1f9   : > { %2030 = vmatprep.subr.bf16.mxu0 %v2029_v11  ;;  %2126 = vmatprep.subr.bf16.mxu1 %v2125_v20  ;;  %v1166_v10 = vld [vmem:[%s2825_s18 + $0x5c8] sm:$0xff]  ;;  %v2047_v11 = vpack.c.bf16 %v1110_v0, %v1107_v63  ;;  %v2143_v20 = vpack.c.bf16 %v1112_v6, %v1109_v5  ;;  %v2049_v21 = vpack.c.bf16 %v1117_v7, %v1114_v3  ;;  %v1153_v6 = vld [vmem:[%s2825_s18 + $0x560] sm:$0xff] }
 0x1fa   : > { %1396 = vmatprep.mubr.f32.mxu1 %v972_v27  ;;  %1243 = vmatprep.mubr.f32.mxu0 %v972_v27  ;;  %v2145_v23 = vpack.c.bf16 %v1166_v10, %v1163_v9  ;;  %v2051_v27 = vpack.c.bf16 %v1116_v19, %v1113_v12  ;;  %v2069_v0 = vpack.c.bf16 %v1147_v59, %v1144_v58  ;;  %v1150_v5 = vld [vmem:[%s2825_s18 + $0x548] sm:$0xff] }
 0x1fb   : > { %1397 = vmatmul.mubr.f32.gmra.mrb[10].mxu1 %v971_v26  ;;  %1244 = vmatmul.mubr.f32.gmra.mrb[6].mxu0 %v971_v26  ;;  %v1169_v26 = vld [vmem:[%s2825_s18 + $0x5e0] sm:$0xff]  ;;  %v2073_v25 = vpack.c.bf16 %v1153_v6, %v1150_v5 }
 0x1fc   : > { %2032 = vmatpush1.bf16.msra.mxu0 %v2031_v18  ;;  %2128 = vmatpush3.bf16.msra.mxu1 %v2127_v31  ;;  %v1172_v18 = vld [vmem:[%s2825_s18 + $0x5f8] sm:$0xff]  ;;  %v2053_v31 = vpack.c.bf16 %v1123_v16, %v1120_v22 }
 0x1fd   : > { %2034 = vmatprep.subr.bf16.mxu0 %v2033_v29  ;;  %2130 = vmatprep.subr.bf16.mxu1 %v2129_v33  ;;  %v1122_v29 = vld [vmem:[%s2825_s18 + $0x468] sm:$0xff]  ;;  %v2149_v32 = vpack.c.bf16 %v1172_v18, %v1169_v26  ;;  %v1121_v33 = vld [vmem:[%s2825_s18 + $0x460] sm:$0xff]  ;;  %v1156_v16 = vld [vmem:[%s2825_s18 + $0x578] sm:$0xff] }
 0x1fe   : > { %v2055_v35 = vpack.c.bf16 %v1122_v29, %v1119_v28  ;;  %v2151_v37 = vpack.c.bf16 %v1124_v34, %v1121_v33  ;;  %v1159_v28 = vld [vmem:[%s2825_s18 + $0x590] sm:$0xff] }
 0x200   : > { %2036 = vmatpush1.bf16.msra.mxu0 %v2035_v38  ;;  %2132 = vmatpush3.bf16.msra.mxu1 %v2131_v41  ;;  %v2057_v38 = vpack.c.bf16 %v1129_v8, %v1126_v49  ;;  %v1132_v41 = vld [vmem:[%s2825_s18 + $0x4b8] sm:$0xff]  ;;  %v2077_v8 = vpack.c.bf16 %v1159_v28, %v1156_v16  ;;  %v978_v28 = vld [vmem:[#allocation2 + $0x18] sm:$0xff] }
 0x201   : > { %2038 = vmatprep.subr.bf16.mxu0 %v2037_v36  ;;  %2134 = vmatprep.subr.bf16.mxu1 %v2133_v43  ;;  %v1135_v36 = vld [vmem:[%s2825_s18 + $0x4d0] sm:$0xff]  ;;  %v2059_v43 = vpack.c.bf16 %v1128_v40, %v1125_v39  ;;  %v1162_v40 = vld [vmem:[%s2825_s18 + $0x5a8] sm:$0xff] }
 0x202   : > { %v2061_v45 = vpack.c.bf16 %v1135_v36, %v1132_v41  ;;  %v1165_v41 = vld [vmem:[%s2825_s18 + $0x5c0] sm:$0xff] }
 0x204   : > { %2040 = vmatpush1.bf16.msra.mxu0 %v2039_v50  ;;  %2136 = vmatpush3.bf16.msra.mxu1 %v2135_v53  ;;  %v1141_v50 = vld [vmem:[%s2825_s18 + $0x500] sm:$0xff]  ;;  %v2063_v53 = vpack.c.bf16 %v1134_v47, %v1131_v46  ;;  %v1164_v47 = vld [vmem:[%s2825_s18 + $0x5b8] sm:$0xff] }
 0x205   : > { %2042 = vmatprep.subr.bf16.mxu0 %v2041_v54  ;;  %2138 = vmatprep.subr.bf16.mxu1 %v2137_v56  ;;  %v2065_v54 = vpack.c.bf16 %v1141_v50, %v1138_v48  ;;  %v1140_v56 = vld [vmem:[%s2825_s18 + $0x4f8] sm:$0xff]  ;;  %v1161_v46 = vld [vmem:[%s2825_s18 + $0x5a0] sm:$0xff]  ;;  %v1171_v50 = vld [vmem:[%s2825_s18 + $0x5f0] sm:$0xff] }
 0x206   : > { %v2067_v63 = vpack.c.bf16 %v1140_v56, %v1137_v55  ;;  %v1168_v48 = vld [vmem:[%s2825_s18 + $0x5d8] sm:$0xff] }
 0x208   : > { %2044 = vmatpush1.bf16.msra.mxu0 %v2043_v62  ;;  %2140 = vmatpush3.bf16.msra.mxu1 %v2139_v1  ;;  %v1143_v1 = vld [vmem:[%s2825_s18 + $0x510] sm:$0xff] }
 0x209   : > { %2046 = vmatprep.subr.bf16.mxu0 %v2045_v2  ;;  %2142 = vmatprep.subr.bf16.mxu1 %v2141_v4  ;;  %v1146_v2 = vld [vmem:[%s2825_s18 + $0x528] sm:$0xff] }
 0x20a   : > { %v2071_v19 = vpack.c.bf16 %v1146_v2, %v1143_v1 }
 0x20c   : > { %2048 = vmatpush1.bf16.msra.mxu0 %v2047_v11  ;;  %2144 = vmatpush3.bf16.msra.mxu1 %v2143_v20  ;;  %v1149_v20 = vld [vmem:[%s2825_s18 + $0x540] sm:$0xff] }
 0x20d   : > { %2050 = vmatprep.subr.bf16.mxu0 %v2049_v21  ;;  %2146 = vmatprep.subr.bf16.mxu1 %v2145_v23  ;;  %v1152_v21 = vld [vmem:[%s2825_s18 + $0x558] sm:$0xff] }
 0x210   : > { %2052 = vmatpush1.bf16.msra.mxu0 %v2051_v27  ;;  %2148 = vmatpush3.bf16.msra.mxu1 %v2147_v30 }
 0x211   : > { %2054 = vmatprep.subr.bf16.mxu0 %v2053_v31  ;;  %2150 = vmatprep.subr.bf16.mxu1 %v2149_v32  ;;  %v2075_v32 = vpack.c.bf16 %v1152_v21, %v1149_v20 }
 0x214   : > { %2056 = vmatpush1.bf16.msra.mxu0 %v2055_v35  ;;  %2152 = vmatpush3.bf16.msra.mxu1 %v2151_v37  ;;  %v1155_v35 = vld [vmem:[%s2825_s18 + $0x570] sm:$0xff]  ;;  %v1158_v37 = vld [vmem:[%s2825_s18 + $0x588] sm:$0xff] }
 0x215   : > { %2058 = vmatprep.subr.bf16.mxu0 %v2057_v38 }
 0x218   : > { %2060 = vmatpush1.bf16.msra.mxu0 %v2059_v43  ;;  %v2079_v43 = vpack.c.bf16 %v1158_v37, %v1155_v35  ;;  %v980_v37 = vld [vmem:[#allocation2 + $0x28] sm:$0xff] }
 0x219   : > { %2062 = vmatprep.subr.bf16.mxu0 %v2061_v45  ;;  %v2081_v45 = vpack.c.bf16 %v1165_v41, %v1162_v40 }
 0x21b   : > { %v892_v57 = vpop.f32.mrb[4].mxu1 }
 0x21c   : > { %v3246_v60 = vadd.f32 %v892_v57, %v586_v51  ;;  %v894_v61 = vpop.f32.mrb[5].mxu1  ;;  %2064 = vmatpush1.bf16.msra.mxu0 %v2063_v53  ;;  %v1167_v53 = vld [vmem:[%s2825_s18 + $0x5d0] sm:$0xff] }
 0x21d   : > { %v3248_v62 = vadd.f32 %v894_v61, %v590_v52  ;;  %2066 = vmatprep.subr.bf16.mxu0 %v2065_v54  ;;  %v1170_v54 = vld [vmem:[%s2825_s18 + $0x5e8] sm:$0xff] }
 0x21e   : > { %v921_v15 = vmul.f32 0.044715, %v3246_v60  ;;  %v913_v22 = vmul.f32 0.7978846, %v3246_v60  ;;  %v2087_v58 = vpack.c.bf16 %v1170_v54, %v1167_v53 }
 0x21f   : > { %v922_v3 = vmul.f32 0.044715, %v3248_v62  ;;  %v898_v4 = vpop.f32.mrb[6].mxu1  ;;  %v914_v26 = vmul.f32 0.7978846, %v3248_v62  ;;  %v906_v59 = vmul.f32 0.5, %v3248_v62 }
 0x220   : > { %v929_v7 = vmul.f32 %v3246_v60, %v921_v15  ;;  %v3257_v9 = vadd.f32 %v898_v4, %v586_v51  ;;  %v900_v10 = vpop.f32.mrb[7].mxu1  ;;  %2068 = vmatpush1.bf16.msra.mxu0 %v2067_v63  ;;  %v2083_v51 = vpack.c.bf16 %v1164_v47, %v1161_v46  ;;  %v905_v63 = vmul.f32 0.5, %v3246_v60 }
 0x221   : > { %v930_v11 = vmul.f32 %v3248_v62, %v922_v3  ;;  %v3260_v12 = vadd.f32 %v900_v10, %v590_v52  ;;  %2070 = vmatprep.subr.bf16.mxu0 %v2069_v0  ;;  %v2085_v52 = vpack.c.bf16 %v1171_v50, %v1168_v48 }
 0x222   : > { %v937_v23 = vadd.f32 1.0, %v929_v7  ;;  %v925_v24 = vmul.f32 0.044715, %v3257_v9  ;;  %v917_v34 = vmul.f32 0.7978846, %v3257_v9  ;;  %v909_v6 = vmul.f32 0.5, %v3257_v9 }
 0x223   : > { %v938_v18 = vadd.f32 1.0, %v930_v11  ;;  %v926_v27 = vmul.f32 0.044715, %v3260_v12  ;;  %v918_v38 = vmul.f32 0.7978846, %v3260_v12  ;;  %v910_v4 = vmul.f32 0.5, %v3260_v12 }
 0x224   : > { %v945_v30 = vmul.f32 %v937_v23, %v913_v22  ;;  %v933_v31 = vmul.f32 %v3257_v9, %v925_v24  ;;  %2072 = vmatpush1.bf16.msra.mxu0 %v2071_v19  ;;  %v975_v22 = vld [vmem:[#allocation2] sm:$0xff] }
 0x225   : > { %v934_v29 = vmul.f32 %v3260_v12, %v926_v27  ;;  %v946_v33 = vmul.f32 %v938_v18, %v914_v26  ;;  %2074 = vmatprep.subr.bf16.mxu0 %v2073_v25  ;;  %v976_v12 = vld [vmem:[#allocation2 + $0x8] sm:$0xff]  ;;  %v977_v18 = vld [vmem:[#allocation2 + $0x10] sm:$0xff] }
 0x226   : > { %2287 = vtanh.f32 %v945_v30  ;;  %v941_v49 = vadd.f32 1.0, %v933_v31 }
 0x227   : > { %v942_v39 = vadd.f32 1.0, %v934_v29  ;;  %2289 = vtanh.f32 %v946_v33  ;;  %v979_v29 = vld [vmem:[#allocation2 + $0x20] sm:$0xff] }
 0x228   : > { %v949_v36 = vmul.f32 %v941_v49, %v917_v34  ;;  %2076 = vmatpush1.bf16.msra.mxu0 %v2075_v32 }
 0x229   : > { %v950_v44 = vmul.f32 %v942_v39, %v918_v38  ;;  %2078 = vmatprep.subr.bf16.mxu0 %v2077_v8 }
 0x22a   : > { %2291 = vtanh.f32 %v949_v36  ;;  %v1499_v36 = vld [vmem:[#allocation11] sm:$0x7] (!%p1686_p12) }
 0x22b   : > { %2293 = vtanh.f32 %v950_v44  ;;  %v1504_v44 = vrot.slane (!%p1686_p12), %v1499_v36, %v577_v14  ;;  %v1512_v47 = vrot.slane (!%p1686_p12), %v1499_v36, %v585_v42 }
 0x22c   : > { %2080 = vmatpush1.bf16.msra.mxu0 %v2079_v43 }
 0x22d   : > { %2082 = vmatprep.subr.bf16.mxu0 %v2081_v45  ;;  %v1508_v45 = vrot.slane (!%p1686_p12), %v1499_v36, %v581_v17 }
 0x230   : > { %v2288_v55 = vpop.eup %2287  ;;  %2084 = vmatpush1.bf16.msra.mxu0 %v2083_v51 }
 0x231   : > { %v2290_v56 = vpop.eup %2289  ;;  %v961_v57 = vadd.f32 1.0, %v2288_v55  ;;  %2086 = vmatprep.subr.bf16.mxu0 %v2085_v52 }
 0x232   : > { %v962_v61 = vadd.f32 1.0, %v2290_v56 }
 0x233   : > { %v969_v2 = vmul.f32 %v961_v57, %v905_v63 }
 0x234   : > { %v2292_v15 = vpop.eup %2291  ;;  %v970_v0 = vmul.f32 %v962_v61, %v906_v59  ;;  %2088 = vmatpush1.bf16.msra.mxu0 %v2087_v58 }
 0x235   : > { %v2294_v1 = vpop.eup %2293  ;;  %v965_v3 = vadd.f32 1.0, %v2292_v15 }
 0x236   : > { %1314 = vmatprep.mubr.f32.mxu0 %v970_v0  ;;  %1466 = vmatprep.mubr.f32.mxu1 %v970_v0  ;;  %v966_v5 = vadd.f32 1.0, %v2294_v1 }
 0x237   : > { %1467 = vmatmul.mubr.f32.vlgmr.msra.gmra.mrb[12].mxu1 %v969_v2  ;;  %1315 = vmatmul.mubr.f32.vlgmr.msra.gmra.mrb[4].mxu0 %v969_v2  ;;  %v973_v62 = vmul.f32 %v965_v3, %v909_v6 }
 0x238   : > { %v974_v7 = vmul.f32 %v966_v5, %v910_v4 }
 0x23a   : > { %1320 = vmatprep.mubr.f32.mxu0 %v974_v7  ;;  %1471 = vmatprep.mubr.f32.mxu1 %v974_v7 }
 0x23b   : > { %1472 = vmatmul.mubr.f32.gmra.mrb[14].mxu1 %v973_v62  ;;  %1321 = vmatmul.mubr.f32.gmra.mrb[6].mxu0 %v973_v62 }
 0x2ca   : > { %v1725_v60 = vpop.f32.mrb[8].mxu1 }
 0x2cb   : > { %v1726_v10 = vpop.f32.mrb[9].mxu1 }
 0x2cc   : > { %v1727_v11 = vadd.f32 %v1726_v10, %v1725_v60 }
 0x2ce   : > { %v1728_v19 = vpop.f32.mrb[10].mxu1 }
 0x2cf   : > { %v1729_v20 = vpop.f32.mrb[11].mxu1 }
 0x2d0   : > { %v1730_v21 = vadd.f32 %v1729_v20, %v1728_v19 }
 0x30a   : > { %v1763_v23 = vpop.f32.mrb[12].mxu1  ;;  %v1316_v24 = vpop.f32.mrb[4].mxu0 }
 0x30b   : > { %v1764_v25 = vpop.f32.mrb[13].mxu1  ;;  %v1477_v16 = vadd.f32 %v1316_v24, %v975_v22  ;;  %v1318_v26 = vpop.f32.mrb[5].mxu0 }
 0x30c   : > { %v1765_v9 = vadd.f32 %v1764_v25, %v1763_v23  ;;  %v1478_v27 = vadd.f32 %v1318_v26, %v976_v12 }
 0x30d   : > { %1483 = vst [vmem:[#allocation2] sm:$0xff] %v1477_v16 }
 0x30e   : > { %v1469_v30 = vadd.f32 %v1765_v9, %v1727_v11  ;;  %v1766_v31 = vpop.f32.mrb[14].mxu1  ;;  %1484 = vst [vmem:[#allocation2 + $0x8] sm:$0xff] %v1478_v27  ;;  %v1322_v32 = vpop.f32.mrb[6].mxu0 }
 0x30f   : > { %v1767_v33 = vpop.f32.mrb[15].mxu1  ;;  %v1480_v49 = vadd.f32 %v1322_v32, %v978_v28  ;;  %v1324_v35 = vpop.f32.mrb[7].mxu0 }
 0x310   : > { %v1479_v34 = vadd.f32 %v1469_v30, %v977_v18  ;;  %v1768_v8 = vadd.f32 %v1767_v33, %v1766_v31  ;;  %v1481_v38 = vadd.f32 %v1324_v35, %v979_v29  ;;  %1492 = sbr.rel (%p1686_p12) target bundleno = 801 (0x321), region = 68 }
 0x311   : > { %1486 = vst [vmem:[#allocation2 + $0x18] sm:$0xff] %v1480_v49 }
 0x312   : > { %1485 = vst [vmem:[#allocation2 + $0x10] sm:$0xff] %v1479_v34  ;;  %v1474_v39 = vadd.f32 %v1768_v8, %v1730_v21  ;;  %1487 = vst [vmem:[#allocation2 + $0x20] sm:$0xff] %v1481_v38 }
 0x314   : > { %v1482_v40 = vadd.f32 %v1474_v39, %v980_v37  ;;  %v1493_v41 = vld [vmem:[#allocation2] sm:$0xff] (!%p1686_p12) }
 0x315   : > { %v1494_v43 = vld [vmem:[#allocation2 + $0x8] sm:$0xff] (!%p1686_p12)  ;;  %v1516_v52 = vadd.f32 (!%p1686_p12), %v1504_v44, %v1493_v41 }
 0x316   : > { %1488 = vst [vmem:[#allocation2 + $0x28] sm:$0xff] %v1482_v40  ;;  %v1517_v53 = vadd.f32 (!%p1686_p12), %v1508_v45, %v1494_v43 }
 0x317   : > { %1522 = vst [vmem:[#allocation12] sm:$0xff] %v1516_v52 }
 0x318   : > { %v1496_v48 = vld [vmem:[#allocation2 + $0x18] sm:$0xff]  ;;  %1523 = vst [vmem:[#allocation12 + $0x8] sm:$0xff] %v1517_v53 }
 0x319   : > { %v1495_v46 = vld [vmem:[#allocation2 + $0x10] sm:$0xff]  ;;  %v1497_v50 = vld [vmem:[#allocation2 + $0x20] sm:$0xff]  ;;  %v1519_v55 = vadd.f32 %v1504_v44, %v1496_v48 }
 0x31a   : > { %v1518_v54 = vadd.f32 %v1512_v47, %v1495_v46  ;;  %v1520_v56 = vadd.f32 %v1508_v45, %v1497_v50 }
 0x31b   : > { %1525 = vst [vmem:[#allocation12 + $0x18] sm:$0xff] %v1519_v55 }
 0x31c   : > { %1524 = vst [vmem:[#allocation12 + $0x10] sm:$0xff] %v1518_v54  ;;  %1526 = vst [vmem:[#allocation12 + $0x20] sm:$0xff] %v1520_v56 }
 0x31d   : > { %v1498_v51 = vld [vmem:[#allocation2 + $0x28] sm:$0xff] }
 0x31e   : > { %v1521_v57 = vadd.f32 %v1512_v47, %v1498_v51 }
 0x320   : > { %1527 = vst [vmem:[#allocation12 + $0x28] sm:$0xff] %v1521_v57 }
 0x321 PF: > { %p2217_p11 = scmp.eq.s32.totalorder %s2609_s24, 2  ;;  %s2547_s30 = smov [#allocation12]  }
 0x322   : > { %s1538_s25 = sshll.u32 %s2547_s30, 4  ;;  %s1539_s25 = int_to_ptr.vmem [resolvable:$true] %s1538_s25 }
 0x323   : > { %s2441_s8 = scalar_lea.vmem %s1539_s25, 768  ;;  %p2448_p6 = scmp.lt.s32.totalorder %s1539_s25, %s1539_s25 }
 0x324   : > { %p2442_p0 = scmp.ne.s32.totalorder %s1539_s25, %s2441_s8  ;;  %p2449_p8 = scmp.lt.s32.totalorder %s2441_s8, %s2441_s8 }
 0x326   : > { %p2443_p7 = pnand %p2442_p0, %p2217_p11  ;;  %p2450_p13 = por %p2449_p8, %p2448_p6 }
 0x328   : > { %p2444_p10 = pneg %p2443_p7 }
 0x32a   : > { %p2451_p3 = pnand %p2450_p13, %p2444_p10 }
 0x32c   : > { %2454 = shalt.err (!%p2451_p3)
}
 0x32d   : > { %s3385_s16 = sld [smem:[#allocation23_spill]] }
 0x333   : > { %s2455_s29 = scalar_lea.hbm %s3385_s16, 768 }
 0x334   : > { %p2456_p1 = scmp.ne.s32.totalorder %s3385_s16, %s2455_s29  ;;  %p2461_p5 = scmp.lt.u32.totalorder %s2455_s29, %s3385_s16 }
 0x336   : > { %p2457_p4 = pnand %p2456_p1, %p2217_p11 }
 0x338   : > { %p2458_p9 = pneg %p2457_p4 }
 0x33a   : > { %p2463_p2 = pnand %p2461_p5, %p2458_p9 }
 0x33c   : > { %2466 = shalt.err (!%p2463_p2)
}
 0x33d   : > { %s2548_s13 = smov 384   ;;  %s2549_s7 = smov 24  }
 0x33e   : > { %2192 = dma.vmem_to_hbm [thread:$0]  (%p2217_p11), %s1539_s25, 768, %s3385_s16, [#allocation5], %s2548_s13, %s2548_s13, %s2549_s7  }
 0x33f   : > { %2508 = dma.done.wait (%p2217_p11), [#allocation5], 768  }
 0x340   : > { %2510 = vsyncadd (%p2217_p11), [#allocation5], 4294966528 }
 0x341 PF: > { %s23_s23 = sadd.s32 1, %s2533_s23   ;;  %s3386_s6 = sld [smem:[#allocation20_spill]] }
 0x342   : > { %p20_p12 = scmp.ge.s32.totalorder %s23_s23, 5   ;;  %s3387_s14 = sld [smem:[#allocation19_spill]] }
 0x343   : > { %s3388_s18 = smov %s2517_s19  ;;  %s3389_s19 = smov %s2521_s20 }
 0x344   : > { %s3391_s21 = smov %s2529_s22  ;;  %22 = sbr.rel (!%p20_p12) target bundleno = 12 (0xc), region = 120 }
 0x347   : > { %s3390_s20 = smov %s3386_s6 }
 0x348   : > { %s3392_s22 = smov %s3387_s14 }
 0x34b   :  { %1554 = vsyncpa [#allocation4], 1 }
 0x34c   :  { %1556 = vsyncpa [#allocation4 + $0x1], 1 }
 0x34d   :  { %1557 = vsyncpa [#allocation7], 1 }
 0x34e   :  { %1559 = vsyncpa [#allocation7 + $0x1], 1 }
 0x34f   :  { %1560 = vsyncpa [#allocation10], 1 }
 0x350   :  { %1562 = vsyncpa [#allocation10 + $0x1], 1 }
 0x351   :  { %1563 = vsyncpa [#allocation5], 1 }
 0x352   :  { %1565 = vsyncpa [#allocation5 + $0x1], 1 }

</bundles_post_ra>
